<compile_context>
chip_gen: v5e
topology: v5e:2x2
jax: 0.10.0
libtpu: 0.0.40
codegen_flags: <defaults>
</compile_context>

<pallas_src>
import functools

import jax
import jax.numpy as jnp
from jax.experimental import pallas as pl
from jax.experimental.pallas import tpu as pltpu


# ----------------------------------------------------------------------------
# Pallas kernels (feature maps in lane-merged layout (1, rows, W*C) per block)
# ----------------------------------------------------------------------------
def _conv_s2_kernel(xe_ref, xo_ref, w_ref, b_ref, o_ref, *, kh, ho, relu_in):
    """4x4 / stride-2 / pad-1 conv as kh banded matmuls.

    xe_ref/xo_ref: (1, rows, W_in*Cin) even/odd row-parity splits of the
    row-padded input.  w_ref: (kh, W_in*Cin, Wo*Cout) bf16 banded weights.
    b_ref: (1, Wo*Cout) f32 (channel bias tiled over Wo)."""
    n = w_ref.shape[-1]
    acc = jnp.zeros((ho, n), jnp.float32)
    for i in range(kh):                                   # unrolled, kh == 4
        src = xe_ref if i % 2 == 0 else xo_ref
        xi = src[0, i // 2:i // 2 + ho, :]
        if relu_in:
            xi = jnp.maximum(xi, 0.0)
        acc += jnp.dot(xi.astype(jnp.bfloat16), w_ref[i],
                       preferred_element_type=jnp.float32)
    acc = acc + b_ref[...]
    o_ref[...] = acc[None].astype(o_ref.dtype)


def _conv_s1_kernel(x_ref, w_ref, b_ref, o_ref, *, kh, ho, relu_in):
    """3x3 / stride-1 / pad-1 conv as kh banded matmuls.

    x_ref: (1, ho+kh-1, W*Cin) row-padded input."""
    n = w_ref.shape[-1]
    acc = jnp.zeros((ho, n), jnp.float32)
    for i in range(kh):                                   # unrolled, kh == 3
        xi = x_ref[0, i:i + ho, :]
        if relu_in:
            xi = jnp.maximum(xi, 0.0)
        acc += jnp.dot(xi.astype(jnp.bfloat16), w_ref[i],
                       preferred_element_type=jnp.float32)
    acc = acc + b_ref[...]
    o_ref[...] = acc[None].astype(o_ref.dtype)


def _res_block_kernel(x_ref, w3_ref, w1_ref, b1_ref, o_ref, *, h, relu_out):
    """Fused residual block: x + conv1x1(relu(conv3x3(relu(x)))) (+bias) [+relu].

    x_ref: (1, h+2, W*C) row-padded input (also supplies the residual term).
    w3_ref: (3, W*C, W*Cr) bf16 banded 3x3 weights.
    w1_ref: (W*Cr, W*C) bf16 block-diagonal 1x1 weights.
    b1_ref: (1, W*C) f32 bias of the 1x1 conv.
    The (W*Cr)-wide intermediate stays in registers/VMEM; it never hits HBM."""
    n_mid = w3_ref.shape[-1]
    acc = jnp.zeros((h, n_mid), jnp.float32)
    for i in range(3):                                    # unrolled
        xi = jnp.maximum(x_ref[0, i:i + h, :], 0.0)       # ReLU at branch input
        acc += jnp.dot(xi.astype(jnp.bfloat16), w3_ref[i],
                       preferred_element_type=jnp.float32)
    hid = jnp.maximum(acc, 0.0).astype(jnp.bfloat16)      # inner ReLU
    y = jnp.dot(hid, w1_ref[...], preferred_element_type=jnp.float32)
    y = y + b1_ref[...]
    out = x_ref[0, 1:1 + h, :] + y                        # residual add (un-ReLU'd x)
    if relu_out:                                          # fused stack-tail ReLU
        out = jnp.maximum(out, 0.0)
    o_ref[...] = out[None].astype(o_ref.dtype)


# ----------------------------------------------------------------------------
# Host-side weight re-packing (built once; no activation data involved)
# ----------------------------------------------------------------------------
def _build_bands(w_oihw, w_in, w_out, stride, pad):
    """OIHW conv weight -> (kh, w_in*Cin, w_out*Cout) banded matrices.

    Band i, block-row u, block-col w holds W[:, :, i, j].T whenever
    u == stride*w + j - pad lies inside the (unpadded) input width; the
    W-boundary zero padding is thereby folded into the band structure."""
    cout, cin, kh, kw = w_oihw.shape
    band = jnp.zeros((kh, w_in * cin, w_out * cout), jnp.float32)
    for i in range(kh):
        for j in range(kw):
            wij = jnp.transpose(w_oihw[:, :, i, j])       # (Cin, Cout)
            for w in range(w_out):
                u = stride * w + j - pad
                if 0 <= u < w_in:
                    band = band.at[i, u * cin:(u + 1) * cin,
                                   w * cout:(w + 1) * cout].set(wij)
    return band


def _build_blockdiag_1x1(w_oihw, w_sp):
    """1x1 conv weight -> (w_sp*Cin, w_sp*Cout) block-diagonal matrix."""
    cout, cin = w_oihw.shape[:2]
    w2 = jnp.transpose(w_oihw[:, :, 0, 0])                # (Cin, Cout)
    m = jnp.zeros((w_sp * cin, w_sp * cout), jnp.float32)
    for w in range(w_sp):
        m = m.at[w * cin:(w + 1) * cin, w * cout:(w + 1) * cout].set(w2)
    return m


# ----------------------------------------------------------------------------
# pallas_call wrappers (operate on lane-merged maps (B, H, W*C), f32)
# ----------------------------------------------------------------------------
_PARALLEL = pltpu.CompilerParams(dimension_semantics=("parallel",))


def conv_stride2(xm, H, W, w_oihw, b, relu_in):
    """4x4, stride-2, pad-1 conv with bias on a lane-merged map."""
    B = xm.shape[0]
    cout, cin = w_oihw.shape[0], w_oihw.shape[1]
    ho, wo = H // 2, W // 2
    xp = jnp.pad(xm, ((0, 0), (1, 1), (0, 0)))            # row (H) padding only
    xe, xo = xp[:, 0::2, :], xp[:, 1::2, :]               # row-parity split
    wb = _build_bands(w_oihw, W, wo, 2, 1).astype(jnp.bfloat16)
    bm = jnp.tile(b.astype(jnp.float32), wo).reshape(1, wo * cout)
    kern = functools.partial(_conv_s2_kernel, kh=4, ho=ho, relu_in=relu_in)
    return pl.pallas_call(
        kern,
        out_shape=jax.ShapeDtypeStruct((B, ho, wo * cout), jnp.float32),
        grid_spec=pltpu.PrefetchScalarGridSpec(
            num_scalar_prefetch=0,
            grid=(B,),
            in_specs=[
                pl.BlockSpec((1,) + xe.shape[1:], lambda bi: (bi, 0, 0)),
                pl.BlockSpec((1,) + xo.shape[1:], lambda bi: (bi, 0, 0)),
                pl.BlockSpec(wb.shape, lambda bi: (0, 0, 0)),
                pl.BlockSpec(bm.shape, lambda bi: (0, 0)),
            ],
            out_specs=pl.BlockSpec((1, ho, wo * cout), lambda bi: (bi, 0, 0)),
        ),
        compiler_params=_PARALLEL,
    )(xe, xo, wb, bm)


def conv3x3_s1(xm, H, W, w_oihw, b, relu_in):
    """3x3, stride-1, pad-1 conv with bias on a lane-merged map."""
    B = xm.shape[0]
    cout, cin = w_oihw.shape[0], w_oihw.shape[1]
    xp = jnp.pad(xm, ((0, 0), (1, 1), (0, 0)))
    wb = _build_bands(w_oihw, W, W, 1, 1).astype(jnp.bfloat16)
    bm = jnp.tile(b.astype(jnp.float32), W).reshape(1, W * cout)
    kern = functools.partial(_conv_s1_kernel, kh=3, ho=H, relu_in=relu_in)
    return pl.pallas_call(
        kern,
        out_shape=jax.ShapeDtypeStruct((B, H, W * cout), jnp.float32),
        grid_spec=pltpu.PrefetchScalarGridSpec(
            num_scalar_prefetch=0,
            grid=(B,),
            in_specs=[
                pl.BlockSpec((1, H + 2, W * cin), lambda bi: (bi, 0, 0)),
                pl.BlockSpec(wb.shape, lambda bi: (0, 0, 0)),
                pl.BlockSpec(bm.shape, lambda bi: (0, 0)),
            ],
            out_specs=pl.BlockSpec((1, H, W * cout), lambda bi: (bi, 0, 0)),
        ),
        compiler_params=_PARALLEL,
    )(xp, wb, bm)


def residual_block(xm, H, W, w3_oihw, w1_oihw, b1, relu_out):
    """Fused: x + conv1x1(relu(conv3x3_nobias(relu(x)))) + b1  [-> relu]."""
    B = xm.shape[0]
    c = w3_oihw.shape[1]
    xp = jnp.pad(xm, ((0, 0), (1, 1), (0, 0)))
    w3b = _build_bands(w3_oihw, W, W, 1, 1).astype(jnp.bfloat16)     # (3, W*c, W*cr)
    w1b = _build_blockdiag_1x1(w1_oihw, W).astype(jnp.bfloat16)      # (W*cr, W*c)
    b1m = jnp.tile(b1.astype(jnp.float32), W).reshape(1, W * c)
    kern = functools.partial(_res_block_kernel, h=H, relu_out=relu_out)
    return pl.pallas_call(
        kern,
        out_shape=jax.ShapeDtypeStruct((B, H, W * c), jnp.float32),
        grid_spec=pltpu.PrefetchScalarGridSpec(
            num_scalar_prefetch=0,
            grid=(B,),
            in_specs=[
                pl.BlockSpec((1, H + 2, W * c), lambda bi: (bi, 0, 0)),
                pl.BlockSpec(w3b.shape, lambda bi: (0, 0, 0)),
                pl.BlockSpec(w1b.shape, lambda bi: (0, 0)),
                pl.BlockSpec(b1m.shape, lambda bi: (0, 0)),
            ],
            out_specs=pl.BlockSpec((1, H, W * c), lambda bi: (bi, 0, 0)),
        ),
        compiler_params=_PARALLEL,
    )(xp, w3b, w1b, b1m)


# ----------------------------------------------------------------------------
# Encoder forward (stride=4 variant), NCHW in / NCHW out like PyTorch
# ----------------------------------------------------------------------------
def encoder_forward(x_nchw, params):
    B, cin, H, W = x_nchw.shape
    nh2 = params["conv1_w"].shape[0]
    nh = params["conv2_w"].shape[0]
    x = jnp.transpose(x_nchw, (0, 2, 3, 1)).reshape(B, H, W * cin)   # lane-merge

    # conv_1 (4x4 s2 p1, bias)
    x = conv_stride2(x, H, W, params["conv1_w"], params["conv1_b"], relu_in=False)
    H, W, c = H // 2, W // 2, nh2
    # res_1
    x = residual_block(x, H, W, params["res1_w3"], params["res1_w1"],
                       params["res1_b1"], relu_out=False)
    # ReLU + conv_2 (4x4 s2 p1, bias)
    x = conv_stride2(x, H, W, params["conv2_w"], params["conv2_b"], relu_in=True)
    H, W, c = H // 2, W // 2, nh
    # res_2
    x = residual_block(x, H, W, params["res2_w3"], params["res2_w1"],
                       params["res2_b1"], relu_out=False)
    # ReLU + conv_3 (3x3 s1 p1, bias)
    x = conv3x3_s1(x, H, W, params["conv3_w"], params["conv3_b"], relu_in=True)
    # residual stack (final block fuses the trailing F.relu)
    n = len(params["stack"])
    for idx, (w3, w1, b1) in enumerate(params["stack"]):
        x = residual_block(x, H, W, w3, w1, b1, relu_out=(idx == n - 1))

    return jnp.transpose(x.reshape(B, H, W, c), (0, 3, 1, 2))        # NHWC -> NCHW


# ----------------------------------------------------------------------------
# Deterministic parameter init (matches module shapes / bias structure)
# ----------------------------------------------------------------------------
def _kaiming_uniform(key, shape_oihw):
    c_out, c_in, kh, kw = shape_oihw
    fan_in = c_in * kh * kw
    bound = (6.0 / fan_in) ** 0.5
    return jax.random.uniform(key, shape_oihw, jnp.float32, -bound, bound)


def _bias_init(key, fan_in, n):
    bound = 1.0 / (fan_in ** 0.5)
    return jax.random.uniform(key, (n,), jnp.float32, -bound, bound)


def make_params(key, in_channels, num_hiddens, num_residual_layers,
                num_residual_hiddens):
    nh2, nh8, nh4 = num_hiddens // 2, num_hiddens // 8, num_hiddens // 4
    keys = iter(jax.random.split(key, 12 + 3 * num_residual_layers))
    nxt = lambda: next(keys)
    p = {}
    p["conv1_w"] = _kaiming_uniform(nxt(), (nh2, in_channels, 4, 4))
    p["conv1_b"] = _bias_init(nxt(), in_channels * 16, nh2)
    p["res1_w3"] = _kaiming_uniform(nxt(), (nh8, nh2, 3, 3))          # bias=False
    p["res1_w1"] = _kaiming_uniform(nxt(), (nh2, nh8, 1, 1))
    p["res1_b1"] = _bias_init(nxt(), nh8, nh2)                        # 1x1 has bias
    p["conv2_w"] = _kaiming_uniform(nxt(), (num_hiddens, nh2, 4, 4))
    p["conv2_b"] = _bias_init(nxt(), nh2 * 16, num_hiddens)
    p["res2_w3"] = _kaiming_uniform(nxt(), (nh4, num_hiddens, 3, 3))
    p["res2_w1"] = _kaiming_uniform(nxt(), (num_hiddens, nh4, 1, 1))
    p["res2_b1"] = _bias_init(nxt(), nh4, num_hiddens)
    p["conv3_w"] = _kaiming_uniform(nxt(), (num_hiddens, num_hiddens, 3, 3))
    p["conv3_b"] = _bias_init(nxt(), num_hiddens * 9, num_hiddens)
    stack = []
    for _ in range(num_residual_layers):
        w3 = _kaiming_uniform(nxt(), (num_residual_hiddens, num_hiddens, 3, 3))
        w1 = _kaiming_uniform(nxt(), (num_hiddens, num_residual_hiddens, 1, 1))
        b1 = _bias_init(nxt(), num_residual_hiddens, num_hiddens)
        stack.append((w3, w1, b1))
    p["stack"] = stack
    return p


# ----------------------------------------------------------------------------
# Pure-JAX reference (lax.conv) for verification.  emulate_bf16=True applies the
# same operand rounding the kernel uses (bf16 operands, f32 accumulation).
# ----------------------------------------------------------------------------
def _bf16_round(x):
    return x.astype(jnp.bfloat16).astype(jnp.float32)


def _ref_conv(x, w_oihw, b, stride, pad, emulate_bf16):
    w = jnp.transpose(w_oihw, (2, 3, 1, 0))               # OIHW -> HWIO
    if emulate_bf16:
        x = _bf16_round(x)
        w = _bf16_round(w)
    out = jax.lax.conv_general_dilated(
        x, w, (stride, stride), [(pad, pad), (pad, pad)],
        dimension_numbers=("NHWC", "HWIO", "NHWC"))
    return out if b is None else out + b


def ref_forward(x_nchw, params, emulate_bf16=False):
    conv = functools.partial(_ref_conv, emulate_bf16=emulate_bf16)
    relu = jax.nn.relu
    x = jnp.transpose(x_nchw, (0, 2, 3, 1))
    x = conv(x, params["conv1_w"], params["conv1_b"], 2, 1)
    x = x + conv(relu(conv(relu(x), params["res1_w3"], None, 1, 1)),
                 params["res1_w1"], params["res1_b1"], 1, 0)
    x = conv(relu(x), params["conv2_w"], params["conv2_b"], 2, 1)
    x = x + conv(relu(conv(relu(x), params["res2_w3"], None, 1, 1)),
                 params["res2_w1"], params["res2_b1"], 1, 0)
    x = conv(relu(x), params["conv3_w"], params["conv3_b"], 1, 1)
    for w3, w1, b1 in params["stack"]:
        x = x + conv(relu(conv(relu(x), w3, None, 1, 1)), w1, b1, 1, 0)
    x = relu(x)
    return jnp.transpose(x, (0, 3, 1, 2))


# ----------------------------------------------------------------------------
if __name__ == "__main__":
    # Encoder(in_channels=3, num_hiddens=32, num_residual_layers=2,
    #         num_residual_hiddens=8, stride=4)
    B, C_IN, H, W = 2, 3, 16, 16
    NUM_HIDDENS, NUM_RES_LAYERS, NUM_RES_HIDDENS = 32, 2, 8

    key = jax.random.PRNGKey(0)
    k_x, k_p = jax.random.split(key)
    x = jax.random.normal(k_x, (B, C_IN, H, W), jnp.float32)   # NCHW like PyTorch
    params = make_params(k_p, C_IN, NUM_HIDDENS, NUM_RES_LAYERS, NUM_RES_HIDDENS)

    out = jax.jit(encoder_forward)(x, params)
    out = jax.block_until_ready(out)
    assert out.shape == (B, NUM_HIDDENS, H // 4, W // 4), out.shape

    def max_rel_err(a, b):
        return float(jnp.max(jnp.abs(a - b)) / (jnp.max(jnp.abs(b)) + 1e-6))

    # Tight structural check against a reference using the same bf16 operand
    # rounding (kernel accumulates in f32, so only accumulation order differs).
    ref_bf16 = jax.block_until_ready(ref_forward(x, params, emulate_bf16=True))
    assert max_rel_err(out, ref_bf16) < 1e-2, max_rel_err(out, ref_bf16)

    # Looser check against the full-f32 reference (covers bf16 operand error).
    ref_f32 = jax.block_until_ready(ref_forward(x, params, emulate_bf16=False))
    assert max_rel_err(out, ref_f32) < 5e-2, max_rel_err(out, ref_f32)

    print("KERNEL_OK")
</pallas_src>

<mosaic_0001>
module attributes {stable_mosaic.version = 11 : i64} {
  func.func @_conv_s2_kernel(%arg0: i32, %arg1: memref<1x9x48xf32, #tpu.memory_space<vmem>>, %arg2: memref<1x9x48xf32, #tpu.memory_space<vmem>>, %arg3: memref<4x48x128xbf16, #tpu.memory_space<vmem>>, %arg4: memref<1x128xf32, #tpu.memory_space<vmem>>, %arg5: memref<1x8x128xf32, #tpu.memory_space<vmem>>) attributes {dimension_semantics = [#tpu.dimension_semantics<parallel>], iteration_bounds = array<i64: 2>, scalar_prefetch = 0 : i64, scratch_operands = 0 : i64, tpu.core_type = #tpu.core_type<tc>, window_params = [{transform_indices = @transform_0, window_bounds = array<i64: 1, 9, 48>}, {transform_indices = @transform_1, window_bounds = array<i64: 1, 9, 48>}, {pipeline_mode = #tpu.pipeline_mode<synchronous>, transform_indices = @transform_2, window_bounds = array<i64: 4, 48, 128>}, {pipeline_mode = #tpu.pipeline_mode<synchronous>, transform_indices = @transform_3, window_bounds = array<i64: 1, 128>}, {transform_indices = @transform_4, window_bounds = array<i64: 1, 8, 128>}]} {
    %cst = arith.constant 0.000000e+00 : f32
    %0 = vector.broadcast %cst : f32 to vector<8x128xf32>
    %c0 = arith.constant 0 : index
    %c0_0 = arith.constant 0 : index
    %c0_1 = arith.constant 0 : index
    %1 = vector.load %arg1[%c0, %c0_0, %c0_1] : memref<1x9x48xf32, #tpu.memory_space<vmem>>, vector<1x8x48xf32>
    %2 = vector.shape_cast %1 : vector<1x8x48xf32> to vector<8x48xf32>
    %3 = arith.truncf %2 : vector<8x48xf32> to vector<8x48xbf16>
    %c0_2 = arith.constant 0 : index
    %c0_3 = arith.constant 0 : index
    %c0_4 = arith.constant 0 : index
    %4 = vector.load %arg3[%c0_2, %c0_3, %c0_4] : memref<4x48x128xbf16, #tpu.memory_space<vmem>>, vector<1x48x128xbf16>
    %5 = vector.shape_cast %4 : vector<1x48x128xbf16> to vector<48x128xbf16>
    %cst_5 = arith.constant dense<0.000000e+00> : vector<8x128xf32>
    %6 = tpu.matmul %3, %5, %cst_5 {dimension_numbers = #tpu.dot_dimension_numbers<[1], [0], [0], [1], [0, 0, 1, 1], [], []>} : vector<8x48xbf16>, vector<48x128xbf16>, vector<8x128xf32> -> vector<8x128xf32>
    %7 = arith.addf %0, %6 : vector<8x128xf32>
    %c0_6 = arith.constant 0 : index
    %c0_7 = arith.constant 0 : index
    %c0_8 = arith.constant 0 : index
    %8 = vector.load %arg2[%c0_6, %c0_7, %c0_8] : memref<1x9x48xf32, #tpu.memory_space<vmem>>, vector<1x8x48xf32>
    %9 = vector.shape_cast %8 : vector<1x8x48xf32> to vector<8x48xf32>
    %10 = arith.truncf %9 : vector<8x48xf32> to vector<8x48xbf16>
    %c1 = arith.constant 1 : index
    %c0_9 = arith.constant 0 : index
    %c0_10 = arith.constant 0 : index
    %11 = vector.load %arg3[%c1, %c0_9, %c0_10] : memref<4x48x128xbf16, #tpu.memory_space<vmem>>, vector<1x48x128xbf16>
    %12 = vector.shape_cast %11 : vector<1x48x128xbf16> to vector<48x128xbf16>
    %cst_11 = arith.constant dense<0.000000e+00> : vector<8x128xf32>
    %13 = tpu.matmul %10, %12, %cst_11 {dimension_numbers = #tpu.dot_dimension_numbers<[1], [0], [0], [1], [0, 0, 1, 1], [], []>} : vector<8x48xbf16>, vector<48x128xbf16>, vector<8x128xf32> -> vector<8x128xf32>
    %14 = arith.addf %7, %13 : vector<8x128xf32>
    %c0_12 = arith.constant 0 : index
    %c1_13 = arith.constant 1 : index
    %c0_14 = arith.constant 0 : index
    %15 = vector.load %arg1[%c0_12, %c1_13, %c0_14] : memref<1x9x48xf32, #tpu.memory_space<vmem>>, vector<1x8x48xf32>
    %16 = vector.shape_cast %15 : vector<1x8x48xf32> to vector<8x48xf32>
    %17 = arith.truncf %16 : vector<8x48xf32> to vector<8x48xbf16>
    %c2 = arith.constant 2 : index
    %c0_15 = arith.constant 0 : index
    %c0_16 = arith.constant 0 : index
    %18 = vector.load %arg3[%c2, %c0_15, %c0_16] : memref<4x48x128xbf16, #tpu.memory_space<vmem>>, vector<1x48x128xbf16>
    %19 = vector.shape_cast %18 : vector<1x48x128xbf16> to vector<48x128xbf16>
    %cst_17 = arith.constant dense<0.000000e+00> : vector<8x128xf32>
    %20 = tpu.matmul %17, %19, %cst_17 {dimension_numbers = #tpu.dot_dimension_numbers<[1], [0], [0], [1], [0, 0, 1, 1], [], []>} : vector<8x48xbf16>, vector<48x128xbf16>, vector<8x128xf32> -> vector<8x128xf32>
    %21 = arith.addf %14, %20 : vector<8x128xf32>
    %c0_18 = arith.constant 0 : index
    %c1_19 = arith.constant 1 : index
    %c0_20 = arith.constant 0 : index
    %22 = vector.load %arg2[%c0_18, %c1_19, %c0_20] : memref<1x9x48xf32, #tpu.memory_space<vmem>>, vector<1x8x48xf32>
    %23 = vector.shape_cast %22 : vector<1x8x48xf32> to vector<8x48xf32>
    %24 = arith.truncf %23 : vector<8x48xf32> to vector<8x48xbf16>
    %c3 = arith.constant 3 : index
    %c0_21 = arith.constant 0 : index
    %c0_22 = arith.constant 0 : index
    %25 = vector.load %arg3[%c3, %c0_21, %c0_22] : memref<4x48x128xbf16, #tpu.memory_space<vmem>>, vector<1x48x128xbf16>
    %26 = vector.shape_cast %25 : vector<1x48x128xbf16> to vector<48x128xbf16>
    %cst_23 = arith.constant dense<0.000000e+00> : vector<8x128xf32>
    %27 = tpu.matmul %24, %26, %cst_23 {dimension_numbers = #tpu.dot_dimension_numbers<[1], [0], [0], [1], [0, 0, 1, 1], [], []>} : vector<8x48xbf16>, vector<48x128xbf16>, vector<8x128xf32> -> vector<8x128xf32>
    %28 = arith.addf %21, %27 : vector<8x128xf32>
    %c0_24 = arith.constant 0 : index
    %c0_25 = arith.constant 0 : index
    %29 = vector.load %arg4[%c0_24, %c0_25] : memref<1x128xf32, #tpu.memory_space<vmem>>, vector<1x128xf32>
    %30 = vector.broadcast %29 : vector<1x128xf32> to vector<8x128xf32>
    %31 = arith.addf %28, %30 : vector<8x128xf32>
    %32 = vector.shape_cast %31 : vector<8x128xf32> to vector<1x8x128xf32>
    %c0_26 = arith.constant 0 : index
    %c0_27 = arith.constant 0 : index
    %c0_28 = arith.constant 0 : index
    %33 = vector.load %arg5[%c0_26, %c0_27, %c0_28] : memref<1x8x128xf32, #tpu.memory_space<vmem>>, vector<1x8x128xf32>
    tpu.vector_store %arg5[%c0_26, %c0_27, %c0_28], %32 {strides = array<i32>} : memref<1x8x128xf32, #tpu.memory_space<vmem>>, vector<1x8x128xf32>,
    return
  }
  func.func @transform_0(%arg0: i32) -> (i32, i32, i32) {
    %c0_i32 = arith.constant 0 : i32
    %c0_i32_0 = arith.constant 0 : i32
    %c0_i32_1 = arith.constant 0 : i32
    return %arg0, %c0_i32, %c0_i32_0 : i32, i32, i32
  }
  func.func @transform_1(%arg0: i32) -> (i32, i32, i32) {
    %c0_i32 = arith.constant 0 : i32
    %c0_i32_0 = arith.constant 0 : i32
    %c0_i32_1 = arith.constant 0 : i32
    return %arg0, %c0_i32, %c0_i32_0 : i32, i32, i32
  }
  func.func @transform_2(%arg0: i32) -> (i32, i32, i32) {
    %c0_i32 = arith.constant 0 : i32
    %c0_i32_0 = arith.constant 0 : i32
    %c0_i32_1 = arith.constant 0 : i32
    %c0_i32_2 = arith.constant 0 : i32
    return %c0_i32, %c0_i32_0, %c0_i32_1 : i32, i32, i32
  }
  func.func @transform_3(%arg0: i32) -> (i32, i32) {
    %c0_i32 = arith.constant 0 : i32
    %c0_i32_0 = arith.constant 0 : i32
    %c0_i32_1 = arith.constant 0 : i32
    return %c0_i32, %c0_i32_0 : i32, i32
  }
  func.func @transform_4(%arg0: i32) -> (i32, i32, i32) {
    %c0_i32 = arith.constant 0 : i32
    %c0_i32_0 = arith.constant 0 : i32
    %c0_i32_1 = arith.constant 0 : i32
    return %arg0, %c0_i32, %c0_i32_0 : i32, i32, i32
  }
}

module attributes {stable_mosaic.version = 11 : i64} {
  func.func @_res_block_kernel(%arg0: i32, %arg1: memref<1x10x128xf32, #tpu.memory_space<vmem>>, %arg2: memref<3x128x32xbf16, #tpu.memory_space<vmem>>, %arg3: memref<32x128xbf16, #tpu.memory_space<vmem>>, %arg4: memref<1x128xf32, #tpu.memory_space<vmem>>, %arg5: memref<1x8x128xf32, #tpu.memory_space<vmem>>) attributes {dimension_semantics = [#tpu.dimension_semantics<parallel>], iteration_bounds = array<i64: 2>, scalar_prefetch = 0 : i64, scratch_operands = 0 : i64, tpu.core_type = #tpu.core_type<tc>, window_params = [{transform_indices = @transform_0, window_bounds = array<i64: 1, 10, 128>}, {pipeline_mode = #tpu.pipeline_mode<synchronous>, transform_indices = @transform_1, window_bounds = array<i64: 3, 128, 32>}, {pipeline_mode = #tpu.pipeline_mode<synchronous>, transform_indices = @transform_2, window_bounds = array<i64: 32, 128>}, {pipeline_mode = #tpu.pipeline_mode<synchronous>, transform_indices = @transform_3, window_bounds = array<i64: 1, 128>}, {transform_indices = @transform_4, window_bounds = array<i64: 1, 8, 128>}]} {
    %cst = arith.constant 0.000000e+00 : f32
    %0 = vector.broadcast %cst : f32 to vector<8x32xf32>
    %c0 = arith.constant 0 : index
    %c0_0 = arith.constant 0 : index
    %c0_1 = arith.constant 0 : index
    %1 = vector.load %arg1[%c0, %c0_0, %c0_1] : memref<1x10x128xf32, #tpu.memory_space<vmem>>, vector<1x8x128xf32>
    %2 = vector.shape_cast %1 : vector<1x8x128xf32> to vector<8x128xf32>
    %cst_2 = arith.constant 0.000000e+00 : f32
    %3 = vector.broadcast %cst_2 : f32 to vector<8x128xf32>
    %4 = arith.maximumf %2, %3 : vector<8x128xf32>
    %5 = arith.truncf %4 : vector<8x128xf32> to vector<8x128xbf16>
    %c0_3 = arith.constant 0 : index
    %c0_4 = arith.constant 0 : index
    %c0_5 = arith.constant 0 : index
    %6 = vector.load %arg2[%c0_3, %c0_4, %c0_5] : memref<3x128x32xbf16, #tpu.memory_space<vmem>>, vector<1x128x32xbf16>
    %7 = vector.shape_cast %6 : vector<1x128x32xbf16> to vector<128x32xbf16>
    %cst_6 = arith.constant dense<0.000000e+00> : vector<8x32xf32>
    %8 = tpu.matmul %5, %7, %cst_6 {dimension_numbers = #tpu.dot_dimension_numbers<[1], [0], [0], [1], [0, 0, 1, 1], [], []>} : vector<8x128xbf16>, vector<128x32xbf16>, vector<8x32xf32> -> vector<8x32xf32>
    %9 = arith.addf %0, %8 : vector<8x32xf32>
    %c0_7 = arith.constant 0 : index
    %c1 = arith.constant 1 : index
    %c0_8 = arith.constant 0 : index
    %10 = vector.load %arg1[%c0_7, %c1, %c0_8] : memref<1x10x128xf32, #tpu.memory_space<vmem>>, vector<1x8x128xf32>
    %11 = vector.shape_cast %10 : vector<1x8x128xf32> to vector<8x128xf32>
    %cst_9 = arith.constant 0.000000e+00 : f32
    %12 = vector.broadcast %cst_9 : f32 to vector<8x128xf32>
    %13 = arith.maximumf %11, %12 : vector<8x128xf32>
    %14 = arith.truncf %13 : vector<8x128xf32> to vector<8x128xbf16>
    %c1_10 = arith.constant 1 : index
    %c0_11 = arith.constant 0 : index
    %c0_12 = arith.constant 0 : index
    %15 = vector.load %arg2[%c1_10, %c0_11, %c0_12] : memref<3x128x32xbf16, #tpu.memory_space<vmem>>, vector<1x128x32xbf16>
    %16 = vector.shape_cast %15 : vector<1x128x32xbf16> to vector<128x32xbf16>
    %cst_13 = arith.constant dense<0.000000e+00> : vector<8x32xf32>
    %17 = tpu.matmul %14, %16, %cst_13 {dimension_numbers = #tpu.dot_dimension_numbers<[1], [0], [0], [1], [0, 0, 1, 1], [], []>} : vector<8x128xbf16>, vector<128x32xbf16>, vector<8x32xf32> -> vector<8x32xf32>
    %18 = arith.addf %9, %17 : vector<8x32xf32>
    %c0_14 = arith.constant 0 : index
    %c2 = arith.constant 2 : index
    %c0_15 = arith.constant 0 : index
    %19 = vector.load %arg1[%c0_14, %c2, %c0_15] : memref<1x10x128xf32, #tpu.memory_space<vmem>>, vector<1x8x128xf32>
    %20 = vector.shape_cast %19 : vector<1x8x128xf32> to vector<8x128xf32>
    %cst_16 = arith.constant 0.000000e+00 : f32
    %21 = vector.broadcast %cst_16 : f32 to vector<8x128xf32>
    %22 = arith.maximumf %20, %21 : vector<8x128xf32>
    %23 = arith.truncf %22 : vector<8x128xf32> to vector<8x128xbf16>
    %c2_17 = arith.constant 2 : index
    %c0_18 = arith.constant 0 : index
    %c0_19 = arith.constant 0 : index
    %24 = vector.load %arg2[%c2_17, %c0_18, %c0_19] : memref<3x128x32xbf16, #tpu.memory_space<vmem>>, vector<1x128x32xbf16>
    %25 = vector.shape_cast %24 : vector<1x128x32xbf16> to vector<128x32xbf16>
    %cst_20 = arith.constant dense<0.000000e+00> : vector<8x32xf32>
    %26 = tpu.matmul %23, %25, %cst_20 {dimension_numbers = #tpu.dot_dimension_numbers<[1], [0], [0], [1], [0, 0, 1, 1], [], []>} : vector<8x128xbf16>, vector<128x32xbf16>, vector<8x32xf32> -> vector<8x32xf32>
    %27 = arith.addf %18, %26 : vector<8x32xf32>
    %cst_21 = arith.constant 0.000000e+00 : f32
    %28 = vector.broadcast %cst_21 : f32 to vector<8x32xf32>
    %29 = arith.maximumf %27, %28 : vector<8x32xf32>
    %30 = arith.truncf %29 : vector<8x32xf32> to vector<8x32xbf16>
    %c0_22 = arith.constant 0 : index
    %c0_23 = arith.constant 0 : index
    %31 = vector.load %arg3[%c0_22, %c0_23] : memref<32x128xbf16, #tpu.memory_space<vmem>>, vector<32x128xbf16>
    %cst_24 = arith.constant dense<0.000000e+00> : vector<8x128xf32>
    %32 = tpu.matmul %30, %31, %cst_24 {dimension_numbers = #tpu.dot_dimension_numbers<[1], [0], [0], [1], [0, 0, 1, 1], [], []>} : vector<8x32xbf16>, vector<32x128xbf16>, vector<8x128xf32> -> vector<8x128xf32>
    %c0_25 = arith.constant 0 : index
    %c0_26 = arith.constant 0 : index
    %33 = vector.load %arg4[%c0_25, %c0_26] : memref<1x128xf32, #tpu.memory_space<vmem>>, vector<1x128xf32>
    %34 = vector.broadcast %33 : vector<1x128xf32> to vector<8x128xf32>
    %35 = arith.addf %32, %34 : vector<8x128xf32>
    %c0_27 = arith.constant 0 : index
    %c1_28 = arith.constant 1 : index
    %c0_29 = arith.constant 0 : index
    %36 = vector.load %arg1[%c0_27, %c1_28, %c0_29] : memref<1x10x128xf32, #tpu.memory_space<vmem>>, vector<1x8x128xf32>
    %37 = vector.shape_cast %36 : vector<1x8x128xf32> to vector<8x128xf32>
    %38 = arith.addf %37, %35 : vector<8x128xf32>
    %39 = vector.shape_cast %38 : vector<8x128xf32> to vector<1x8x128xf32>
    %c0_30 = arith.constant 0 : index
    %c0_31 = arith.constant 0 : index
    %c0_32 = arith.constant 0 : index
    %40 = vector.load %arg5[%c0_30, %c0_31, %c0_32] : memref<1x8x128xf32, #tpu.memory_space<vmem>>, vector<1x8x128xf32>
    tpu.vector_store %arg5[%c0_30, %c0_31, %c0_32], %39 {strides = array<i32>} : memref<1x8x128xf32, #tpu.memory_space<vmem>>, vector<1x8x128xf32>,
    return
  }
  func.func @transform_0(%arg0: i32) -> (i32, i32, i32) {
    %c0_i32 = arith.constant 0 : i32
    %c0_i32_0 = arith.constant 0 : i32
    %c0_i32_1 = arith.constant 0 : i32
    return %arg0, %c0_i32, %c0_i32_0 : i32, i32, i32
  }
  func.func @transform_1(%arg0: i32) -> (i32, i32, i32) {
    %c0_i32 = arith.constant 0 : i32
    %c0_i32_0 = arith.constant 0 : i32
    %c0_i32_1 = arith.constant 0 : i32
    %c0_i32_2 = arith.constant 0 : i32
    return %c0_i32, %c0_i32_0, %c0_i32_1 : i32, i32, i32
  }
  func.func @transform_2(%arg0: i32) -> (i32, i32) {
    %c0_i32 = arith.constant 0 : i32
    %c0_i32_0 = arith.constant 0 : i32
    %c0_i32_1 = arith.constant 0 : i32
    return %c0_i32, %c0_i32_0 : i32, i32
  }
  func.func @transform_3(%arg0: i32) -> (i32, i32) {
    %c0_i32 = arith.constant 0 : i32
    %c0_i32_0 = arith.constant 0 : i32
    %c0_i32_1 = arith.constant 0 : i32
    return %c0_i32, %c0_i32_0 : i32, i32
  }
  func.func @transform_4(%arg0: i32) -> (i32, i32, i32) {
    %c0_i32 = arith.constant 0 : i32
    %c0_i32_0 = arith.constant 0 : i32
    %c0_i32_1 = arith.constant 0 : i32
    return %arg0, %c0_i32, %c0_i32_0 : i32, i32, i32
  }
}

module attributes {stable_mosaic.version = 11 : i64} {
  func.func @_conv_s2_kernel(%arg0: i32, %arg1: memref<1x5x128xf32, #tpu.memory_space<vmem>>, %arg2: memref<1x5x128xf32, #tpu.memory_space<vmem>>, %arg3: memref<4x128x128xbf16, #tpu.memory_space<vmem>>, %arg4: memref<1x128xf32, #tpu.memory_space<vmem>>, %arg5: memref<1x4x128xf32, #tpu.memory_space<vmem>>) attributes {dimension_semantics = [#tpu.dimension_semantics<parallel>], iteration_bounds = array<i64: 2>, scalar_prefetch = 0 : i64, scratch_operands = 0 : i64, tpu.core_type = #tpu.core_type<tc>, window_params = [{transform_indices = @transform_0, window_bounds = array<i64: 1, 5, 128>}, {transform_indices = @transform_1, window_bounds = array<i64: 1, 5, 128>}, {pipeline_mode = #tpu.pipeline_mode<synchronous>, transform_indices = @transform_2, window_bounds = array<i64: 4, 128, 128>}, {pipeline_mode = #tpu.pipeline_mode<synchronous>, transform_indices = @transform_3, window_bounds = array<i64: 1, 128>}, {transform_indices = @transform_4, window_bounds = array<i64: 1, 4, 128>}]} {
    %cst = arith.constant 0.000000e+00 : f32
    %0 = vector.broadcast %cst : f32 to vector<4x128xf32>
    %c0 = arith.constant 0 : index
    %c0_0 = arith.constant 0 : index
    %c0_1 = arith.constant 0 : index
    %1 = vector.load %arg1[%c0, %c0_0, %c0_1] : memref<1x5x128xf32, #tpu.memory_space<vmem>>, vector<1x4x128xf32>
    %2 = vector.shape_cast %1 : vector<1x4x128xf32> to vector<4x128xf32>
    %cst_2 = arith.constant 0.000000e+00 : f32
    %3 = vector.broadcast %cst_2 : f32 to vector<4x128xf32>
    %4 = arith.maximumf %2, %3 : vector<4x128xf32>
    %5 = arith.truncf %4 : vector<4x128xf32> to vector<4x128xbf16>
    %c0_3 = arith.constant 0 : index
    %c0_4 = arith.constant 0 : index
    %c0_5 = arith.constant 0 : index
    %6 = vector.load %arg3[%c0_3, %c0_4, %c0_5] : memref<4x128x128xbf16, #tpu.memory_space<vmem>>, vector<1x128x128xbf16>
    %7 = vector.shape_cast %6 : vector<1x128x128xbf16> to vector<128x128xbf16>
    %cst_6 = arith.constant dense<0.000000e+00> : vector<4x128xf32>
    %8 = tpu.matmul %5, %7, %cst_6 {dimension_numbers = #tpu.dot_dimension_numbers<[1], [0], [0], [1], [0, 0, 1, 1], [], []>} : vector<4x128xbf16>, vector<128x128xbf16>, vector<4x128xf32> -> vector<4x128xf32>
    %9 = arith.addf %0, %8 : vector<4x128xf32>
    %c0_7 = arith.constant 0 : index
    %c0_8 = arith.constant 0 : index
    %c0_9 = arith.constant 0 : index
    %10 = vector.load %arg2[%c0_7, %c0_8, %c0_9] : memref<1x5x128xf32, #tpu.memory_space<vmem>>, vector<1x4x128xf32>
    %11 = vector.shape_cast %10 : vector<1x4x128xf32> to vector<4x128xf32>
    %cst_10 = arith.constant 0.000000e+00 : f32
    %12 = vector.broadcast %cst_10 : f32 to vector<4x128xf32>
    %13 = arith.maximumf %11, %12 : vector<4x128xf32>
    %14 = arith.truncf %13 : vector<4x128xf32> to vector<4x128xbf16>
    %c1 = arith.constant 1 : index
    %c0_11 = arith.constant 0 : index
    %c0_12 = arith.constant 0 : index
    %15 = vector.load %arg3[%c1, %c0_11, %c0_12] : memref<4x128x128xbf16, #tpu.memory_space<vmem>>, vector<1x128x128xbf16>
    %16 = vector.shape_cast %15 : vector<1x128x128xbf16> to vector<128x128xbf16>
    %cst_13 = arith.constant dense<0.000000e+00> : vector<4x128xf32>
    %17 = tpu.matmul %14, %16, %cst_13 {dimension_numbers = #tpu.dot_dimension_numbers<[1], [0], [0], [1], [0, 0, 1, 1], [], []>} : vector<4x128xbf16>, vector<128x128xbf16>, vector<4x128xf32> -> vector<4x128xf32>
    %18 = arith.addf %9, %17 : vector<4x128xf32>
    %c0_14 = arith.constant 0 : index
    %c1_15 = arith.constant 1 : index
    %c0_16 = arith.constant 0 : index
    %19 = vector.load %arg1[%c0_14, %c1_15, %c0_16] : memref<1x5x128xf32, #tpu.memory_space<vmem>>, vector<1x4x128xf32>
    %20 = vector.shape_cast %19 : vector<1x4x128xf32> to vector<4x128xf32>
    %cst_17 = arith.constant 0.000000e+00 : f32
    %21 = vector.broadcast %cst_17 : f32 to vector<4x128xf32>
    %22 = arith.maximumf %20, %21 : vector<4x128xf32>
    %23 = arith.truncf %22 : vector<4x128xf32> to vector<4x128xbf16>
    %c2 = arith.constant 2 : index
    %c0_18 = arith.constant 0 : index
    %c0_19 = arith.constant 0 : index
    %24 = vector.load %arg3[%c2, %c0_18, %c0_19] : memref<4x128x128xbf16, #tpu.memory_space<vmem>>, vector<1x128x128xbf16>
    %25 = vector.shape_cast %24 : vector<1x128x128xbf16> to vector<128x128xbf16>
    %cst_20 = arith.constant dense<0.000000e+00> : vector<4x128xf32>
    %26 = tpu.matmul %23, %25, %cst_20 {dimension_numbers = #tpu.dot_dimension_numbers<[1], [0], [0], [1], [0, 0, 1, 1], [], []>} : vector<4x128xbf16>, vector<128x128xbf16>, vector<4x128xf32> -> vector<4x128xf32>
    %27 = arith.addf %18, %26 : vector<4x128xf32>
    %c0_21 = arith.constant 0 : index
    %c1_22 = arith.constant 1 : index
    %c0_23 = arith.constant 0 : index
    %28 = vector.load %arg2[%c0_21, %c1_22, %c0_23] : memref<1x5x128xf32, #tpu.memory_space<vmem>>, vector<1x4x128xf32>
    %29 = vector.shape_cast %28 : vector<1x4x128xf32> to vector<4x128xf32>
    %cst_24 = arith.constant 0.000000e+00 : f32
    %30 = vector.broadcast %cst_24 : f32 to vector<4x128xf32>
    %31 = arith.maximumf %29, %30 : vector<4x128xf32>
    %32 = arith.truncf %31 : vector<4x128xf32> to vector<4x128xbf16>
    %c3 = arith.constant 3 : index
    %c0_25 = arith.constant 0 : index
    %c0_26 = arith.constant 0 : index
    %33 = vector.load %arg3[%c3, %c0_25, %c0_26] : memref<4x128x128xbf16, #tpu.memory_space<vmem>>, vector<1x128x128xbf16>
    %34 = vector.shape_cast %33 : vector<1x128x128xbf16> to vector<128x128xbf16>
    %cst_27 = arith.constant dense<0.000000e+00> : vector<4x128xf32>
    %35 = tpu.matmul %32, %34, %cst_27 {dimension_numbers = #tpu.dot_dimension_numbers<[1], [0], [0], [1], [0, 0, 1, 1], [], []>} : vector<4x128xbf16>, vector<128x128xbf16>, vector<4x128xf32> -> vector<4x128xf32>
    %36 = arith.addf %27, %35 : vector<4x128xf32>
    %c0_28 = arith.constant 0 : index
    %c0_29 = arith.constant 0 : index
    %37 = vector.load %arg4[%c0_28, %c0_29] : memref<1x128xf32, #tpu.memory_space<vmem>>, vector<1x128xf32>
    %38 = vector.broadcast %37 : vector<1x128xf32> to vector<4x128xf32>
    %39 = arith.addf %36, %38 : vector<4x128xf32>
    %40 = vector.shape_cast %39 : vector<4x128xf32> to vector<1x4x128xf32>
    %c0_30 = arith.constant 0 : index
    %c0_31 = arith.constant 0 : index
    %c0_32 = arith.constant 0 : index
    %41 = vector.load %arg5[%c0_30, %c0_31, %c0_32] : memref<1x4x128xf32, #tpu.memory_space<vmem>>, vector<1x4x128xf32>
    tpu.vector_store %arg5[%c0_30, %c0_31, %c0_32], %40 {strides = array<i32>} : memref<1x4x128xf32, #tpu.memory_space<vmem>>, vector<1x4x128xf32>,
    return
  }
  func.func @transform_0(%arg0: i32) -> (i32, i32, i32) {
    %c0_i32 = arith.constant 0 : i32
    %c0_i32_0 = arith.constant 0 : i32
    %c0_i32_1 = arith.constant 0 : i32
    return %arg0, %c0_i32, %c0_i32_0 : i32, i32, i32
  }
  func.func @transform_1(%arg0: i32) -> (i32, i32, i32) {
    %c0_i32 = arith.constant 0 : i32
    %c0_i32_0 = arith.constant 0 : i32
    %c0_i32_1 = arith.constant 0 : i32
    return %arg0, %c0_i32, %c0_i32_0 : i32, i32, i32
  }
  func.func @transform_2(%arg0: i32) -> (i32, i32, i32) {
    %c0_i32 = arith.constant 0 : i32
    %c0_i32_0 = arith.constant 0 : i32
    %c0_i32_1 = arith.constant 0 : i32
    %c0_i32_2 = arith.constant 0 : i32
    return %c0_i32, %c0_i32_0, %c0_i32_1 : i32, i32, i32
  }
  func.func @transform_3(%arg0: i32) -> (i32, i32) {
    %c0_i32 = arith.constant 0 : i32
    %c0_i32_0 = arith.constant 0 : i32
    %c0_i32_1 = arith.constant 0 : i32
    return %c0_i32, %c0_i32_0 : i32, i32
  }
  func.func @transform_4(%arg0: i32) -> (i32, i32, i32) {
    %c0_i32 = arith.constant 0 : i32
    %c0_i32_0 = arith.constant 0 : i32
    %c0_i32_1 = arith.constant 0 : i32
    return %arg0, %c0_i32, %c0_i32_0 : i32, i32, i32
  }
}

module attributes {stable_mosaic.version = 11 : i64} {
  func.func @_res_block_kernel(%arg0: i32, %arg1: memref<1x6x128xf32, #tpu.memory_space<vmem>>, %arg2: memref<3x128x32xbf16, #tpu.memory_space<vmem>>, %arg3: memref<32x128xbf16, #tpu.memory_space<vmem>>, %arg4: memref<1x128xf32, #tpu.memory_space<vmem>>, %arg5: memref<1x4x128xf32, #tpu.memory_space<vmem>>) attributes {dimension_semantics = [#tpu.dimension_semantics<parallel>], iteration_bounds = array<i64: 2>, scalar_prefetch = 0 : i64, scratch_operands = 0 : i64, tpu.core_type = #tpu.core_type<tc>, window_params = [{transform_indices = @transform_0, window_bounds = array<i64: 1, 6, 128>}, {pipeline_mode = #tpu.pipeline_mode<synchronous>, transform_indices = @transform_1, window_bounds = array<i64: 3, 128, 32>}, {pipeline_mode = #tpu.pipeline_mode<synchronous>, transform_indices = @transform_2, window_bounds = array<i64: 32, 128>}, {pipeline_mode = #tpu.pipeline_mode<synchronous>, transform_indices = @transform_3, window_bounds = array<i64: 1, 128>}, {transform_indices = @transform_4, window_bounds = array<i64: 1, 4, 128>}]} {
    %cst = arith.constant 0.000000e+00 : f32
    %0 = vector.broadcast %cst : f32 to vector<4x32xf32>
    %c0 = arith.constant 0 : index
    %c0_0 = arith.constant 0 : index
    %c0_1 = arith.constant 0 : index
    %1 = vector.load %arg1[%c0, %c0_0, %c0_1] : memref<1x6x128xf32, #tpu.memory_space<vmem>>, vector<1x4x128xf32>
    %2 = vector.shape_cast %1 : vector<1x4x128xf32> to vector<4x128xf32>
    %cst_2 = arith.constant 0.000000e+00 : f32
    %3 = vector.broadcast %cst_2 : f32 to vector<4x128xf32>
    %4 = arith.maximumf %2, %3 : vector<4x128xf32>
    %5 = arith.truncf %4 : vector<4x128xf32> to vector<4x128xbf16>
    %c0_3 = arith.constant 0 : index
    %c0_4 = arith.constant 0 : index
    %c0_5 = arith.constant 0 : index
    %6 = vector.load %arg2[%c0_3, %c0_4, %c0_5] : memref<3x128x32xbf16, #tpu.memory_space<vmem>>, vector<1x128x32xbf16>
    %7 = vector.shape_cast %6 : vector<1x128x32xbf16> to vector<128x32xbf16>
    %cst_6 = arith.constant dense<0.000000e+00> : vector<4x32xf32>
    %8 = tpu.matmul %5, %7, %cst_6 {dimension_numbers = #tpu.dot_dimension_numbers<[1], [0], [0], [1], [0, 0, 1, 1], [], []>} : vector<4x128xbf16>, vector<128x32xbf16>, vector<4x32xf32> -> vector<4x32xf32>
    %9 = arith.addf %0, %8 : vector<4x32xf32>
    %c0_7 = arith.constant 0 : index
    %c1 = arith.constant 1 : index
    %c0_8 = arith.constant 0 : index
    %10 = vector.load %arg1[%c0_7, %c1, %c0_8] : memref<1x6x128xf32, #tpu.memory_space<vmem>>, vector<1x4x128xf32>
    %11 = vector.shape_cast %10 : vector<1x4x128xf32> to vector<4x128xf32>
    %cst_9 = arith.constant 0.000000e+00 : f32
    %12 = vector.broadcast %cst_9 : f32 to vector<4x128xf32>
    %13 = arith.maximumf %11, %12 : vector<4x128xf32>
    %14 = arith.truncf %13 : vector<4x128xf32> to vector<4x128xbf16>
    %c1_10 = arith.constant 1 : index
    %c0_11 = arith.constant 0 : index
    %c0_12 = arith.constant 0 : index
    %15 = vector.load %arg2[%c1_10, %c0_11, %c0_12] : memref<3x128x32xbf16, #tpu.memory_space<vmem>>, vector<1x128x32xbf16>
    %16 = vector.shape_cast %15 : vector<1x128x32xbf16> to vector<128x32xbf16>
    %cst_13 = arith.constant dense<0.000000e+00> : vector<4x32xf32>
    %17 = tpu.matmul %14, %16, %cst_13 {dimension_numbers = #tpu.dot_dimension_numbers<[1], [0], [0], [1], [0, 0, 1, 1], [], []>} : vector<4x128xbf16>, vector<128x32xbf16>, vector<4x32xf32> -> vector<4x32xf32>
    %18 = arith.addf %9, %17 : vector<4x32xf32>
    %c0_14 = arith.constant 0 : index
    %c2 = arith.constant 2 : index
    %c0_15 = arith.constant 0 : index
    %19 = vector.load %arg1[%c0_14, %c2, %c0_15] : memref<1x6x128xf32, #tpu.memory_space<vmem>>, vector<1x4x128xf32>
    %20 = vector.shape_cast %19 : vector<1x4x128xf32> to vector<4x128xf32>
    %cst_16 = arith.constant 0.000000e+00 : f32
    %21 = vector.broadcast %cst_16 : f32 to vector<4x128xf32>
    %22 = arith.maximumf %20, %21 : vector<4x128xf32>
    %23 = arith.truncf %22 : vector<4x128xf32> to vector<4x128xbf16>
    %c2_17 = arith.constant 2 : index
    %c0_18 = arith.constant 0 : index
    %c0_19 = arith.constant 0 : index
    %24 = vector.load %arg2[%c2_17, %c0_18, %c0_19] : memref<3x128x32xbf16, #tpu.memory_space<vmem>>, vector<1x128x32xbf16>
    %25 = vector.shape_cast %24 : vector<1x128x32xbf16> to vector<128x32xbf16>
    %cst_20 = arith.constant dense<0.000000e+00> : vector<4x32xf32>
    %26 = tpu.matmul %23, %25, %cst_20 {dimension_numbers = #tpu.dot_dimension_numbers<[1], [0], [0], [1], [0, 0, 1, 1], [], []>} : vector<4x128xbf16>, vector<128x32xbf16>, vector<4x32xf32> -> vector<4x32xf32>
    %27 = arith.addf %18, %26 : vector<4x32xf32>
    %cst_21 = arith.constant 0.000000e+00 : f32
    %28 = vector.broadcast %cst_21 : f32 to vector<4x32xf32>
    %29 = arith.maximumf %27, %28 : vector<4x32xf32>
    %30 = arith.truncf %29 : vector<4x32xf32> to vector<4x32xbf16>
    %c0_22 = arith.constant 0 : index
    %c0_23 = arith.constant 0 : index
    %31 = vector.load %arg3[%c0_22, %c0_23] : memref<32x128xbf16, #tpu.memory_space<vmem>>, vector<32x128xbf16>
    %cst_24 = arith.constant dense<0.000000e+00> : vector<4x128xf32>
    %32 = tpu.matmul %30, %31, %cst_24 {dimension_numbers = #tpu.dot_dimension_numbers<[1], [0], [0], [1], [0, 0, 1, 1], [], []>} : vector<4x32xbf16>, vector<32x128xbf16>, vector<4x128xf32> -> vector<4x128xf32>
    %c0_25 = arith.constant 0 : index
    %c0_26 = arith.constant 0 : index
    %33 = vector.load %arg4[%c0_25, %c0_26] : memref<1x128xf32, #tpu.memory_space<vmem>>, vector<1x128xf32>
    %34 = vector.broadcast %33 : vector<1x128xf32> to vector<4x128xf32>
    %35 = arith.addf %32, %34 : vector<4x128xf32>
    %c0_27 = arith.constant 0 : index
    %c1_28 = arith.constant 1 : index
    %c0_29 = arith.constant 0 : index
    %36 = vector.load %arg1[%c0_27, %c1_28, %c0_29] : memref<1x6x128xf32, #tpu.memory_space<vmem>>, vector<1x4x128xf32>
    %37 = vector.shape_cast %36 : vector<1x4x128xf32> to vector<4x128xf32>
    %38 = arith.addf %37, %35 : vector<4x128xf32>
    %39 = vector.shape_cast %38 : vector<4x128xf32> to vector<1x4x128xf32>
    %c0_30 = arith.constant 0 : index
    %c0_31 = arith.constant 0 : index
    %c0_32 = arith.constant 0 : index
    %40 = vector.load %arg5[%c0_30, %c0_31, %c0_32] : memref<1x4x128xf32, #tpu.memory_space<vmem>>, vector<1x4x128xf32>
    tpu.vector_store %arg5[%c0_30, %c0_31, %c0_32], %39 {strides = array<i32>} : memref<1x4x128xf32, #tpu.memory_space<vmem>>, vector<1x4x128xf32>,
    return
  }
  func.func @transform_0(%arg0: i32) -> (i32, i32, i32) {
    %c0_i32 = arith.constant 0 : i32
    %c0_i32_0 = arith.constant 0 : i32
    %c0_i32_1 = arith.constant 0 : i32
    return %arg0, %c0_i32, %c0_i32_0 : i32, i32, i32
  }
  func.func @transform_1(%arg0: i32) -> (i32, i32, i32) {
    %c0_i32 = arith.constant 0 : i32
    %c0_i32_0 = arith.constant 0 : i32
    %c0_i32_1 = arith.constant 0 : i32
    %c0_i32_2 = arith.constant 0 : i32
    return %c0_i32, %c0_i32_0, %c0_i32_1 : i32, i32, i32
  }
  func.func @transform_2(%arg0: i32) -> (i32, i32) {
    %c0_i32 = arith.constant 0 : i32
    %c0_i32_0 = arith.constant 0 : i32
    %c0_i32_1 = arith.constant 0 : i32
    return %c0_i32, %c0_i32_0 : i32, i32
  }
  func.func @transform_3(%arg0: i32) -> (i32, i32) {
    %c0_i32 = arith.constant 0 : i32
    %c0_i32_0 = arith.constant 0 : i32
    %c0_i32_1 = arith.constant 0 : i32
    return %c0_i32, %c0_i32_0 : i32, i32
  }
  func.func @transform_4(%arg0: i32) -> (i32, i32, i32) {
    %c0_i32 = arith.constant 0 : i32
    %c0_i32_0 = arith.constant 0 : i32
    %c0_i32_1 = arith.constant 0 : i32
    return %arg0, %c0_i32, %c0_i32_0 : i32, i32, i32
  }
}

module attributes {stable_mosaic.version = 11 : i64} {
  func.func @_conv_s1_kernel(%arg0: i32, %arg1: memref<1x6x128xf32, #tpu.memory_space<vmem>>, %arg2: memref<3x128x128xbf16, #tpu.memory_space<vmem>>, %arg3: memref<1x128xf32, #tpu.memory_space<vmem>>, %arg4: memref<1x4x128xf32, #tpu.memory_space<vmem>>) attributes {dimension_semantics = [#tpu.dimension_semantics<parallel>], iteration_bounds = array<i64: 2>, scalar_prefetch = 0 : i64, scratch_operands = 0 : i64, tpu.core_type = #tpu.core_type<tc>, window_params = [{transform_indices = @transform_0, window_bounds = array<i64: 1, 6, 128>}, {pipeline_mode = #tpu.pipeline_mode<synchronous>, transform_indices = @transform_1, window_bounds = array<i64: 3, 128, 128>}, {pipeline_mode = #tpu.pipeline_mode<synchronous>, transform_indices = @transform_2, window_bounds = array<i64: 1, 128>}, {transform_indices = @transform_3, window_bounds = array<i64: 1, 4, 128>}]} {
    %cst = arith.constant 0.000000e+00 : f32
    %0 = vector.broadcast %cst : f32 to vector<4x128xf32>
    %c0 = arith.constant 0 : index
    %c0_0 = arith.constant 0 : index
    %c0_1 = arith.constant 0 : index
    %1 = vector.load %arg1[%c0, %c0_0, %c0_1] : memref<1x6x128xf32, #tpu.memory_space<vmem>>, vector<1x4x128xf32>
    %2 = vector.shape_cast %1 : vector<1x4x128xf32> to vector<4x128xf32>
    %cst_2 = arith.constant 0.000000e+00 : f32
    %3 = vector.broadcast %cst_2 : f32 to vector<4x128xf32>
    %4 = arith.maximumf %2, %3 : vector<4x128xf32>
    %5 = arith.truncf %4 : vector<4x128xf32> to vector<4x128xbf16>
    %c0_3 = arith.constant 0 : index
    %c0_4 = arith.constant 0 : index
    %c0_5 = arith.constant 0 : index
    %6 = vector.load %arg2[%c0_3, %c0_4, %c0_5] : memref<3x128x128xbf16, #tpu.memory_space<vmem>>, vector<1x128x128xbf16>
    %7 = vector.shape_cast %6 : vector<1x128x128xbf16> to vector<128x128xbf16>
    %cst_6 = arith.constant dense<0.000000e+00> : vector<4x128xf32>
    %8 = tpu.matmul %5, %7, %cst_6 {dimension_numbers = #tpu.dot_dimension_numbers<[1], [0], [0], [1], [0, 0, 1, 1], [], []>} : vector<4x128xbf16>, vector<128x128xbf16>, vector<4x128xf32> -> vector<4x128xf32>
    %9 = arith.addf %0, %8 : vector<4x128xf32>
    %c0_7 = arith.constant 0 : index
    %c1 = arith.constant 1 : index
    %c0_8 = arith.constant 0 : index
    %10 = vector.load %arg1[%c0_7, %c1, %c0_8] : memref<1x6x128xf32, #tpu.memory_space<vmem>>, vector<1x4x128xf32>
    %11 = vector.shape_cast %10 : vector<1x4x128xf32> to vector<4x128xf32>
    %cst_9 = arith.constant 0.000000e+00 : f32
    %12 = vector.broadcast %cst_9 : f32 to vector<4x128xf32>
    %13 = arith.maximumf %11, %12 : vector<4x128xf32>
    %14 = arith.truncf %13 : vector<4x128xf32> to vector<4x128xbf16>
    %c1_10 = arith.constant 1 : index
    %c0_11 = arith.constant 0 : index
    %c0_12 = arith.constant 0 : index
    %15 = vector.load %arg2[%c1_10, %c0_11, %c0_12] : memref<3x128x128xbf16, #tpu.memory_space<vmem>>, vector<1x128x128xbf16>
    %16 = vector.shape_cast %15 : vector<1x128x128xbf16> to vector<128x128xbf16>
    %cst_13 = arith.constant dense<0.000000e+00> : vector<4x128xf32>
    %17 = tpu.matmul %14, %16, %cst_13 {dimension_numbers = #tpu.dot_dimension_numbers<[1], [0], [0], [1], [0, 0, 1, 1], [], []>} : vector<4x128xbf16>, vector<128x128xbf16>, vector<4x128xf32> -> vector<4x128xf32>
    %18 = arith.addf %9, %17 : vector<4x128xf32>
    %c0_14 = arith.constant 0 : index
    %c2 = arith.constant 2 : index
    %c0_15 = arith.constant 0 : index
    %19 = vector.load %arg1[%c0_14, %c2, %c0_15] : memref<1x6x128xf32, #tpu.memory_space<vmem>>, vector<1x4x128xf32>
    %20 = vector.shape_cast %19 : vector<1x4x128xf32> to vector<4x128xf32>
    %cst_16 = arith.constant 0.000000e+00 : f32
    %21 = vector.broadcast %cst_16 : f32 to vector<4x128xf32>
    %22 = arith.maximumf %20, %21 : vector<4x128xf32>
    %23 = arith.truncf %22 : vector<4x128xf32> to vector<4x128xbf16>
    %c2_17 = arith.constant 2 : index
    %c0_18 = arith.constant 0 : index
    %c0_19 = arith.constant 0 : index
    %24 = vector.load %arg2[%c2_17, %c0_18, %c0_19] : memref<3x128x128xbf16, #tpu.memory_space<vmem>>, vector<1x128x128xbf16>
    %25 = vector.shape_cast %24 : vector<1x128x128xbf16> to vector<128x128xbf16>
    %cst_20 = arith.constant dense<0.000000e+00> : vector<4x128xf32>
    %26 = tpu.matmul %23, %25, %cst_20 {dimension_numbers = #tpu.dot_dimension_numbers<[1], [0], [0], [1], [0, 0, 1, 1], [], []>} : vector<4x128xbf16>, vector<128x128xbf16>, vector<4x128xf32> -> vector<4x128xf32>
    %27 = arith.addf %18, %26 : vector<4x128xf32>
    %c0_21 = arith.constant 0 : index
    %c0_22 = arith.constant 0 : index
    %28 = vector.load %arg3[%c0_21, %c0_22] : memref<1x128xf32, #tpu.memory_space<vmem>>, vector<1x128xf32>
    %29 = vector.broadcast %28 : vector<1x128xf32> to vector<4x128xf32>
    %30 = arith.addf %27, %29 : vector<4x128xf32>
    %31 = vector.shape_cast %30 : vector<4x128xf32> to vector<1x4x128xf32>
    %c0_23 = arith.constant 0 : index
    %c0_24 = arith.constant 0 : index
    %c0_25 = arith.constant 0 : index
    %32 = vector.load %arg4[%c0_23, %c0_24, %c0_25] : memref<1x4x128xf32, #tpu.memory_space<vmem>>, vector<1x4x128xf32>
    tpu.vector_store %arg4[%c0_23, %c0_24, %c0_25], %31 {strides = array<i32>} : memref<1x4x128xf32, #tpu.memory_space<vmem>>, vector<1x4x128xf32>,
    return
  }
  func.func @transform_0(%arg0: i32) -> (i32, i32, i32) {
    %c0_i32 = arith.constant 0 : i32
    %c0_i32_0 = arith.constant 0 : i32
    %c0_i32_1 = arith.constant 0 : i32
    return %arg0, %c0_i32, %c0_i32_0 : i32, i32, i32
  }
  func.func @transform_1(%arg0: i32) -> (i32, i32, i32) {
    %c0_i32 = arith.constant 0 : i32
    %c0_i32_0 = arith.constant 0 : i32
    %c0_i32_1 = arith.constant 0 : i32
    %c0_i32_2 = arith.constant 0 : i32
    return %c0_i32, %c0_i32_0, %c0_i32_1 : i32, i32, i32
  }
  func.func @transform_2(%arg0: i32) -> (i32, i32) {
    %c0_i32 = arith.constant 0 : i32
    %c0_i32_0 = arith.constant 0 : i32
    %c0_i32_1 = arith.constant 0 : i32
    return %c0_i32, %c0_i32_0 : i32, i32
  }
  func.func @transform_3(%arg0: i32) -> (i32, i32, i32) {
    %c0_i32 = arith.constant 0 : i32
    %c0_i32_0 = arith.constant 0 : i32
    %c0_i32_1 = arith.constant 0 : i32
    return %arg0, %c0_i32, %c0_i32_0 : i32, i32, i32
  }
}

module attributes {stable_mosaic.version = 11 : i64} {
  func.func @_res_block_kernel(%arg0: i32, %arg1: memref<1x6x128xf32, #tpu.memory_space<vmem>>, %arg2: memref<3x128x32xbf16, #tpu.memory_space<vmem>>, %arg3: memref<32x128xbf16, #tpu.memory_space<vmem>>, %arg4: memref<1x128xf32, #tpu.memory_space<vmem>>, %arg5: memref<1x4x128xf32, #tpu.memory_space<vmem>>) attributes {dimension_semantics = [#tpu.dimension_semantics<parallel>], iteration_bounds = array<i64: 2>, scalar_prefetch = 0 : i64, scratch_operands = 0 : i64, tpu.core_type = #tpu.core_type<tc>, window_params = [{transform_indices = @transform_0, window_bounds = array<i64: 1, 6, 128>}, {pipeline_mode = #tpu.pipeline_mode<synchronous>, transform_indices = @transform_1, window_bounds = array<i64: 3, 128, 32>}, {pipeline_mode = #tpu.pipeline_mode<synchronous>, transform_indices = @transform_2, window_bounds = array<i64: 32, 128>}, {pipeline_mode = #tpu.pipeline_mode<synchronous>, transform_indices = @transform_3, window_bounds = array<i64: 1, 128>}, {transform_indices = @transform_4, window_bounds = array<i64: 1, 4, 128>}]} {
    %cst = arith.constant 0.000000e+00 : f32
    %0 = vector.broadcast %cst : f32 to vector<4x32xf32>
    %c0 = arith.constant 0 : index
    %c0_0 = arith.constant 0 : index
    %c0_1 = arith.constant 0 : index
    %1 = vector.load %arg1[%c0, %c0_0, %c0_1] : memref<1x6x128xf32, #tpu.memory_space<vmem>>, vector<1x4x128xf32>
    %2 = vector.shape_cast %1 : vector<1x4x128xf32> to vector<4x128xf32>
    %cst_2 = arith.constant 0.000000e+00 : f32
    %3 = vector.broadcast %cst_2 : f32 to vector<4x128xf32>
    %4 = arith.maximumf %2, %3 : vector<4x128xf32>
    %5 = arith.truncf %4 : vector<4x128xf32> to vector<4x128xbf16>
    %c0_3 = arith.constant 0 : index
    %c0_4 = arith.constant 0 : index
    %c0_5 = arith.constant 0 : index
    %6 = vector.load %arg2[%c0_3, %c0_4, %c0_5] : memref<3x128x32xbf16, #tpu.memory_space<vmem>>, vector<1x128x32xbf16>
    %7 = vector.shape_cast %6 : vector<1x128x32xbf16> to vector<128x32xbf16>
    %cst_6 = arith.constant dense<0.000000e+00> : vector<4x32xf32>
    %8 = tpu.matmul %5, %7, %cst_6 {dimension_numbers = #tpu.dot_dimension_numbers<[1], [0], [0], [1], [0, 0, 1, 1], [], []>} : vector<4x128xbf16>, vector<128x32xbf16>, vector<4x32xf32> -> vector<4x32xf32>
    %9 = arith.addf %0, %8 : vector<4x32xf32>
    %c0_7 = arith.constant 0 : index
    %c1 = arith.constant 1 : index
    %c0_8 = arith.constant 0 : index
    %10 = vector.load %arg1[%c0_7, %c1, %c0_8] : memref<1x6x128xf32, #tpu.memory_space<vmem>>, vector<1x4x128xf32>
    %11 = vector.shape_cast %10 : vector<1x4x128xf32> to vector<4x128xf32>
    %cst_9 = arith.constant 0.000000e+00 : f32
    %12 = vector.broadcast %cst_9 : f32 to vector<4x128xf32>
    %13 = arith.maximumf %11, %12 : vector<4x128xf32>
    %14 = arith.truncf %13 : vector<4x128xf32> to vector<4x128xbf16>
    %c1_10 = arith.constant 1 : index
    %c0_11 = arith.constant 0 : index
    %c0_12 = arith.constant 0 : index
    %15 = vector.load %arg2[%c1_10, %c0_11, %c0_12] : memref<3x128x32xbf16, #tpu.memory_space<vmem>>, vector<1x128x32xbf16>
    %16 = vector.shape_cast %15 : vector<1x128x32xbf16> to vector<128x32xbf16>
    %cst_13 = arith.constant dense<0.000000e+00> : vector<4x32xf32>
    %17 = tpu.matmul %14, %16, %cst_13 {dimension_numbers = #tpu.dot_dimension_numbers<[1], [0], [0], [1], [0, 0, 1, 1], [], []>} : vector<4x128xbf16>, vector<128x32xbf16>, vector<4x32xf32> -> vector<4x32xf32>
    %18 = arith.addf %9, %17 : vector<4x32xf32>
    %c0_14 = arith.constant 0 : index
    %c2 = arith.constant 2 : index
    %c0_15 = arith.constant 0 : index
    %19 = vector.load %arg1[%c0_14, %c2, %c0_15] : memref<1x6x128xf32, #tpu.memory_space<vmem>>, vector<1x4x128xf32>
    %20 = vector.shape_cast %19 : vector<1x4x128xf32> to vector<4x128xf32>
    %cst_16 = arith.constant 0.000000e+00 : f32
    %21 = vector.broadcast %cst_16 : f32 to vector<4x128xf32>
    %22 = arith.maximumf %20, %21 : vector<4x128xf32>
    %23 = arith.truncf %22 : vector<4x128xf32> to vector<4x128xbf16>
    %c2_17 = arith.constant 2 : index
    %c0_18 = arith.constant 0 : index
    %c0_19 = arith.constant 0 : index
    %24 = vector.load %arg2[%c2_17, %c0_18, %c0_19] : memref<3x128x32xbf16, #tpu.memory_space<vmem>>, vector<1x128x32xbf16>
    %25 = vector.shape_cast %24 : vector<1x128x32xbf16> to vector<128x32xbf16>
    %cst_20 = arith.constant dense<0.000000e+00> : vector<4x32xf32>
    %26 = tpu.matmul %23, %25, %cst_20 {dimension_numbers = #tpu.dot_dimension_numbers<[1], [0], [0], [1], [0, 0, 1, 1], [], []>} : vector<4x128xbf16>, vector<128x32xbf16>, vector<4x32xf32> -> vector<4x32xf32>
    %27 = arith.addf %18, %26 : vector<4x32xf32>
    %cst_21 = arith.constant 0.000000e+00 : f32
    %28 = vector.broadcast %cst_21 : f32 to vector<4x32xf32>
    %29 = arith.maximumf %27, %28 : vector<4x32xf32>
    %30 = arith.truncf %29 : vector<4x32xf32> to vector<4x32xbf16>
    %c0_22 = arith.constant 0 : index
    %c0_23 = arith.constant 0 : index
    %31 = vector.load %arg3[%c0_22, %c0_23] : memref<32x128xbf16, #tpu.memory_space<vmem>>, vector<32x128xbf16>
    %cst_24 = arith.constant dense<0.000000e+00> : vector<4x128xf32>
    %32 = tpu.matmul %30, %31, %cst_24 {dimension_numbers = #tpu.dot_dimension_numbers<[1], [0], [0], [1], [0, 0, 1, 1], [], []>} : vector<4x32xbf16>, vector<32x128xbf16>, vector<4x128xf32> -> vector<4x128xf32>
    %c0_25 = arith.constant 0 : index
    %c0_26 = arith.constant 0 : index
    %33 = vector.load %arg4[%c0_25, %c0_26] : memref<1x128xf32, #tpu.memory_space<vmem>>, vector<1x128xf32>
    %34 = vector.broadcast %33 : vector<1x128xf32> to vector<4x128xf32>
    %35 = arith.addf %32, %34 : vector<4x128xf32>
    %c0_27 = arith.constant 0 : index
    %c1_28 = arith.constant 1 : index
    %c0_29 = arith.constant 0 : index
    %36 = vector.load %arg1[%c0_27, %c1_28, %c0_29] : memref<1x6x128xf32, #tpu.memory_space<vmem>>, vector<1x4x128xf32>
    %37 = vector.shape_cast %36 : vector<1x4x128xf32> to vector<4x128xf32>
    %38 = arith.addf %37, %35 : vector<4x128xf32>
    %cst_30 = arith.constant 0.000000e+00 : f32
    %39 = vector.broadcast %cst_30 : f32 to vector<4x128xf32>
    %40 = arith.maximumf %38, %39 : vector<4x128xf32>
    %41 = vector.shape_cast %40 : vector<4x128xf32> to vector<1x4x128xf32>
    %c0_31 = arith.constant 0 : index
    %c0_32 = arith.constant 0 : index
    %c0_33 = arith.constant 0 : index
    %42 = vector.load %arg5[%c0_31, %c0_32, %c0_33] : memref<1x4x128xf32, #tpu.memory_space<vmem>>, vector<1x4x128xf32>
    tpu.vector_store %arg5[%c0_31, %c0_32, %c0_33], %41 {strides = array<i32>} : memref<1x4x128xf32, #tpu.memory_space<vmem>>, vector<1x4x128xf32>,
    return
  }
  func.func @transform_0(%arg0: i32) -> (i32, i32, i32) {
    %c0_i32 = arith.constant 0 : i32
    %c0_i32_0 = arith.constant 0 : i32
    %c0_i32_1 = arith.constant 0 : i32
    return %arg0, %c0_i32, %c0_i32_0 : i32, i32, i32
  }
  func.func @transform_1(%arg0: i32) -> (i32, i32, i32) {
    %c0_i32 = arith.constant 0 : i32
    %c0_i32_0 = arith.constant 0 : i32
    %c0_i32_1 = arith.constant 0 : i32
    %c0_i32_2 = arith.constant 0 : i32
    return %c0_i32, %c0_i32_0, %c0_i32_1 : i32, i32, i32
  }
  func.func @transform_2(%arg0: i32) -> (i32, i32) {
    %c0_i32 = arith.constant 0 : i32
    %c0_i32_0 = arith.constant 0 : i32
    %c0_i32_1 = arith.constant 0 : i32
    return %c0_i32, %c0_i32_0 : i32, i32
  }
  func.func @transform_3(%arg0: i32) -> (i32, i32) {
    %c0_i32 = arith.constant 0 : i32
    %c0_i32_0 = arith.constant 0 : i32
    %c0_i32_1 = arith.constant 0 : i32
    return %c0_i32, %c0_i32_0 : i32, i32
  }
  func.func @transform_4(%arg0: i32) -> (i32, i32, i32) {
    %c0_i32 = arith.constant 0 : i32
    %c0_i32_0 = arith.constant 0 : i32
    %c0_i32_1 = arith.constant 0 : i32
    return %arg0, %c0_i32, %c0_i32_0 : i32, i32, i32
  }
}

</mosaic_0001>

<bundles_post_ra>
// kernel: tile.38
= control target key start
LH: loop header
LB: loop body
LE: loop exit
PB: predicated region body
PF: predicated region fallthrough
CT: control target
= control target key end

     0   :  { %s22_s0 = inlined_call_operand.vmem [shape: f32[16], index: 0, kind: input, shape index: {}]   ;;  %s23_s1 = inlined_call_operand.vmem [shape: f32[8,16], index: 1, kind: output, shape index: {}]  }
   0x1   :  { %v4_v0 = vld [vmem:[%s22_s0] ss:$0 sm:$0xff] }
   0x2   :  { %5 = vst [vmem:[%s23_s1] sm:$0xff] %v4_v0 }

// kernel: tile.39
= control target key start
LH: loop header
LB: loop body
LE: loop exit
PB: predicated region body
PF: predicated region fallthrough
CT: control target
= control target key end

     0   :  { %s67_s10 = smov 112   ;;  %s68_s11 = smov 80   ;;  %vm3_vm0 = vcmask 130048   ;;  %vm9_vm1 = vcmask 1048448   ;;  %vm15_vm2 = vcmask 917248   ;;  %vm21_vm3 = vcmask 786048   ;;  %s111_s0 = inlined_call_operand.vmem [shape: f32[8,16], index: 0, kind: input, shape index: {}]   ;;  %s112_s1 = inlined_call_operand.vmem [shape: f32[1,128], index: 1, kind: output, shape index: {}]  }
   0x1   :  { %v53_v0 = vld [vmem:[%s111_s0 + $0x7] sm:$0x1]   ;;  %v55_v1 = vld [vmem:[%s111_s0 + $0x5] sm:$0x1]   ;;  %v57_v2 = vld [vmem:[%s111_s0 + $0x3] sm:$0x1]  }
   0x2   :  { %7 = vrot.lane.b32.xlu0 %v53_v0, %s67_s10  ;;  %19 = vrot.lane.b32.xlu1 %v55_v1, %s68_s11  ;;  %s69_s14 = smov 48   ;;  %v54_v3 = vld [vmem:[%s111_s0 + $0x6] sm:$0x1]   ;;  %v56_v4 = vld [vmem:[%s111_s0 + $0x4] sm:$0x1]   ;;  %s70_s21 = smov 96  }
   0x3   :  { %31 = vrot.lane.b32.xlu2 %v57_v2, %s69_s14  ;;  %v58_v5 = vld [vmem:[%s111_s0 + $0x2] sm:$0x1]   ;;  %s71_s22 = smov 64   ;;  %s72_s23 = smov 32   ;;  %v59_v6 = vld [vmem:[%s111_s0 + $0x1] sm:$0x1]  }
   0x4   :  { %s73_s26 = smov 16   ;;  %v2_v7 = vld [vmem:[%s111_s0] sm:$0x1]   ;;  %vm27_vm4 = vcmask 654848   ;;  %vm33_vm5 = vcmask 523648   ;;  %vm39_vm6 = vcmask 392448  }
   0x5   :  { %4 = vst.msk [vmem:[#allocation0] sm:$0x1] %vm3_vm0, %v2_v7   ;;  %vm45_vm7 = vcmask 261248  }
   0xa   :  { %13 = vrot.lane.b32.xlu0 %v54_v3, %s70_s21  ;;  %25 = vrot.lane.b32.xlu1 %v56_v4, %s71_s22 }
   0xb   :  { %37 = vrot.lane.b32.xlu2 %v58_v5, %s72_s23 }
  0x12   :  { %43 = vrot.lane.b32.xlu0 %v59_v6, %s73_s26 }
  0x5d   :  { %v32_v8 = vpop.permute.xlu2 %31  }
  0x65   :  { %v38_v9 = vpop.permute.xlu2 %37  }
  0x74   :  { %v8_v10 = vpop.permute.xlu0 %7   ;;  %v20_v11 = vpop.permute.xlu1 %19  }
  0x75   :  { %10 = vst.msk [vmem:[#allocation0] sm:$0x1] %vm9_vm1, %v8_v10  }
  0x7c   :  { %v14_v12 = vpop.permute.xlu0 %13   ;;  %v26_v13 = vpop.permute.xlu1 %25  }
  0x7d   :  { %16 = vst.msk [vmem:[#allocation0] sm:$0x1] %vm15_vm2, %v14_v12  }
  0x7e   :  { %22 = vst.msk [vmem:[#allocation0] sm:$0x1] %vm21_vm3, %v20_v11  }
  0x7f   :  { %28 = vst.msk [vmem:[#allocation0] sm:$0x1] %vm27_vm4, %v26_v13  }
  0x80   :  { %34 = vst.msk [vmem:[#allocation0] sm:$0x1] %vm33_vm5, %v32_v8  }
  0x81   :  { %40 = vst.msk [vmem:[#allocation0] sm:$0x1] %vm39_vm6, %v38_v9  }
  0x84   :  { %v44_v14 = vpop.permute.xlu0 %43  }
  0x85   :  { %46 = vst.msk [vmem:[#allocation0] sm:$0x1] %vm45_vm7, %v44_v14  }
  0x8c   :  { %v49_v15 = vld [vmem:[#allocation0] sm:$0x1] }
  0x8d   :  { %52 = vst [vmem:[%s112_s1] sm:$0x1] %v49_v15 }

// kernel: encoder_forward.7
= control target key start
LH: loop header
LB: loop body
LE: loop exit
PB: predicated region body
PF: predicated region fallthrough
CT: control target
= control target key end

     0   :  { %s600_s15 = smov 0   ;;  %s663_s0 = inlined_call_operand.vmem [shape: f32[2,9,48], index: 0, kind: input, shape index: {}]   ;;  %s664_s1 = inlined_call_operand.vmem [shape: f32[2,9,48], index: 1, kind: input, shape index: {}]   ;;  %s665_s2 = inlined_call_operand.vmem [shape: bf16[4,48,128], index: 2, kind: input, shape index: {}]   ;;  %s666_s3 = inlined_call_operand.vmem [shape: f32[1,128], index: 3, kind: input, shape index: {}]   ;;  %s667_s4 = inlined_call_operand.vmem [shape: f32[2,8,128], index: 4, kind: output, shape index: {}]  }
   0x1 LB: > { %s462_s16 = sadd.s32 4294967295, %s573_s15   ;;  %p466_p0 = scmp.ge.s32.totalorder %s573_s15, 1  ;;  %s573_s15 = sphi %s600_s15, %s14_s15  }
   0x2   : > { %p172_p1 = scmp.lt.s32.totalorder %s573_s15, 3 }
   0x4   : > { %p173_p2 = pnand %p466_p0, %p172_p1 }
   0x5   : > { %p202_p3 = scmp.lt.s32.totalorder (!%p173_p2), %s462_s16, 1 }
   0x6   : > { %176 = sbr.rel (%p173_p2) target bundleno = 164 (0xa4), region = 36 }
   0xb   : > { %v551_v0 = vld [vmem:[%s665_s2 + $0x28] sm:$0xff]  ;;  %v548_v1 = vld [vmem:[%s665_s2 + $0x10] sm:$0xff]  ;;  %v554_v2 = vld [vmem:[%s665_s2 + $0x40] sm:$0xff]  ;;  %s669_s16 = smov (!%p202_p3, %s462_s16), 1  ;;  %vm252_vm0 = vcmask 392192  }
   0xc   : > { %v557_v3 = vld [vmem:[%s665_s2 + $0x58] sm:$0xff]  ;;  %261 = vmatpush.bf16.msra.mxu0 %v551_v0  ;;  %295 = vmatpush.bf16.msra.mxu1 %v548_v1  ;;  %v550_v4 = vld [vmem:[%s665_s2 + $0x20] sm:$0xff]  ;;  %v547_v5 = vld [vmem:[%s665_s2 + $0x8] sm:$0xff]  ;;  %s544_s7 = sshll.u32 %s669_s16, 4  ;;  %s471_s24 = sshll.u32 %s669_s16, 3 }
   0xd   : > { %338 = vmatpush.bf16.msra.mxu2 %v554_v2  ;;  %382 = vmatpush.bf16.msra.mxu3 %v557_v3  ;;  %v553_v6 = vld [vmem:[%s665_s2 + $0x38] sm:$0xff]  ;;  %v556_v7 = vld [vmem:[%s665_s2 + $0x50] sm:$0xff]  ;;  %v546_v9 = vld [vmem:[%s665_s2] sm:$0xff]  ;;  %s211_s14 = scalar_lea.vmem %s664_s1, %s544_s7  ;;  %s206_s19 = scalar_lea.vmem %s663_s0, %s544_s7 }
   0xe   : > { %v549_v8 = vld [vmem:[%s665_s2 + $0x18] sm:$0xff]  ;;  %v552_v10 = vld [vmem:[%s665_s2 + $0x30] sm:$0xff]  ;;  %v225_v11 = vld [vmem:[%s211_s14] sm:$0xff]  ;;  %s215_s29 = scalar_lea.vmem %s667_s4, %s471_s24 }
   0xf   : > { %v217_v12 = vld [vmem:[%s206_s19] sm:$0xff]  ;;  %v555_v13 = vld [vmem:[%s665_s2 + $0x48] sm:$0xff]  ;;  %v226_v16 = vpack.c.bf16 %v225_v11, %v225_v11 }
  0x10   : > { %262 = vmatpush.bf16.msra.mxu0 %v550_v4  ;;  %296 = vmatpush.bf16.msra.mxu1 %v547_v5  ;;  %v303_v14 = vld [vmem:[%s206_s19 + $0x1] sm:$0xff]  ;;  %v218_v17 = vpack.c.bf16 %v217_v12, %v217_v12  ;;  %v566_v26 = vld [vmem:[%s666_s3] ss:$0 sm:$0xff] }
  0x11   : > { %339 = vmatpush.bf16.msra.mxu2 %v553_v6  ;;  %383 = vmatpush.bf16.msra.mxu3 %v556_v7  ;;  %v347_v15 = vld [vmem:[%s211_s14 + $0x1] sm:$0xff]  ;;  %v304_v18 = vpack.c.bf16 %v303_v14, %v303_v14 }
  0x12   : > { %v348_v19 = vpack.c.bf16 %v347_v15, %v347_v15 }
  0x14   : > { %263 = vmatpush.bf16.msra.mxu0 %v549_v8  ;;  %297 = vmatpush.bf16.msra.mxu1 %v546_v9 }
  0x15   : > { %340 = vmatpush.bf16.msra.mxu2 %v552_v10  ;;  %384 = vmatpush.bf16.msra.mxu3 %v555_v13 }
  0x17   : > { %490 = vmatmul.msk.bf16.vlgmr.msra.gmra.mxu0 %vm252_vm0, %v226_v16  ;;  %503 = vmatmul.msk.bf16.vlgmr.msra.gmra.mxu1 %vm252_vm0, %v218_v17 }
  0x18   : > { %522 = vmatmul.msk.bf16.vlgmr.msra.gmra.mxu2 %vm252_vm0, %v304_v18  ;;  %541 = vmatmul.msk.bf16.vlgmr.msra.gmra.mxu3 %vm252_vm0, %v348_v19 }
  0x94   : > { %v265_v20 = vpop.f32.mrf.mxu0  ;;  %v299_v21 = vpop.f32.mrf.mxu1 }
  0x95   : > { %v300_v22 = vadd.f32 %v299_v21, %v265_v20 }
  0x9b   : > { %v342_v23 = vpop.f32.mrf.mxu2  ;;  %v386_v24 = vpop.f32.mrf.mxu3 }
  0x9c   : > { %v346_v25 = vadd.f32 %v342_v23, %v300_v22  ;;  %v267_v27 = vpop.f32.mrf.mxu0  ;;  %v301_v28 = vpop.f32.mrf.mxu1 }
  0x9e   : > { %v390_v29 = vadd.f32 %v386_v24, %v346_v25 }
  0xa0   : > { %v395_v30 = vadd.f32 %v566_v26, %v390_v29 }
  0xa2   : > { %396 = vst [vmem:[%s215_s29] sm:$0xff] %v395_v30 }
  0xa3   : > { %v344_v31 = vpop.f32.mrf.mxu2  ;;  %v388_v32 = vpop.f32.mrf.mxu3 }
  0xa4 PF: > { %s14_s15 = sadd.s32 1, %s573_s15  }
  0xa5   : > { %p11_p4 = scmp.ge.s32.totalorder %s14_s15, 4  }
  0xa7   :  { %13 = sbr.rel (!%p11_p4) target bundleno = 1 (0x1), region = 72 }

// kernel: encoder_forward.8
= control target key start
LH: loop header
LB: loop body
LE: loop exit
PB: predicated region body
PF: predicated region fallthrough
CT: control target
= control target key end

     0   :  { %s750_s15 = smov 0   ;;  %s852_s0 = inlined_call_operand.vmem [shape: f32[2,10,128], index: 0, kind: input, shape index: {}]   ;;  %s853_s1 = inlined_call_operand.vmem [shape: bf16[3,128,32], index: 1, kind: input, shape index: {}]   ;;  %s854_s2 = inlined_call_operand.vmem [shape: bf16[32,128], index: 2, kind: input, shape index: {}]   ;;  %s855_s3 = inlined_call_operand.vmem [shape: f32[1,128], index: 3, kind: input, shape index: {}]   ;;  %s856_s4 = inlined_call_operand.vmem [shape: f32[2,8,128], index: 4, kind: output, shape index: {}]  }
   0x1 LB: > { %s534_s16 = sadd.s32 4294967295, %s723_s15   ;;  %p538_p0 = scmp.ge.s32.totalorder %s723_s15, 1  ;;  %s723_s15 = sphi %s750_s15, %s14_s15  }
   0x2   : > { %p162_p1 = scmp.lt.s32.totalorder %s723_s15, 3 }
   0x4   : > { %p163_p2 = pnand %p538_p0, %p162_p1 }
   0x5   : > { %p187_p3 = scmp.lt.s32.totalorder (!%p163_p2), %s534_s16, 1 }
   0x6   : > { %166 = sbr.rel (%p163_p2) target bundleno = 323 (0x143), region = 36 }
   0xb   : > { %v697_v0 = vld [vmem:[%s853_s1 + $0x78] sm:$0xff]  ;;  %v696_v3 = vld [vmem:[%s853_s1 + $0x70] sm:$0xff]  ;;  %v695_v6 = vld [vmem:[%s853_s1 + $0x68] sm:$0xff]  ;;  %s858_s16 = smov (!%p187_p3, %s534_s16), 1  ;;  %vm462_vm0 = vcmask 261120  }
   0xc   : > { %v689_v1 = vld [vmem:[%s853_s1 + $0x38] sm:$0xff]  ;;  %284 = vmatpush.bf16.msra.mxu0 %v697_v0  ;;  %v688_v4 = vld [vmem:[%s853_s1 + $0x30] sm:$0xff]  ;;  %v687_v7 = vld [vmem:[%s853_s1 + $0x28] sm:$0xff]  ;;  %s681_s23 = sshll.u32 %s858_s16, 4  ;;  %s541_s27 = sshll.u32 %s858_s16, 3 }
   0xd   : > { %v705_v2 = vld [vmem:[%s853_s1 + $0xb8] sm:$0xff]  ;;  %345 = vmatpush.bf16.msra.mxu1 %v689_v1  ;;  %v704_v5 = vld [vmem:[%s853_s1 + $0xb0] sm:$0xff]  ;;  %v703_v8 = vld [vmem:[%s853_s1 + $0xa8] sm:$0xff]  ;;  %s191_s6 = scalar_lea.vmem %s852_s0, %s681_s23  ;;  %s195_s30 = scalar_lea.vmem %s856_s4, %s541_s27 }
   0xe   : > { %426 = vmatpush.bf16.msra.mxu2 %v705_v2  ;;  %v694_v9 = vld [vmem:[%s853_s1 + $0x60] sm:$0xff]  ;;  %v693_v12 = vld [vmem:[%s853_s1 + $0x58] sm:$0xff]  ;;  %v692_v15 = vld [vmem:[%s853_s1 + $0x50] sm:$0xff] }
   0xf   : > { %v686_v10 = vld [vmem:[%s853_s1 + $0x20] sm:$0xff]  ;;  %v685_v13 = vld [vmem:[%s853_s1 + $0x18] sm:$0xff]  ;;  %v684_v16 = vld [vmem:[%s853_s1 + $0x10] sm:$0xff] }
  0x10   : > { %285 = vmatpush.bf16.msra.mxu0 %v696_v3  ;;  %v702_v11 = vld [vmem:[%s853_s1 + $0xa0] sm:$0xff]  ;;  %v701_v14 = vld [vmem:[%s853_s1 + $0x98] sm:$0xff]  ;;  %v700_v17 = vld [vmem:[%s853_s1 + $0x90] sm:$0xff] }
  0x11   : > { %346 = vmatpush.bf16.msra.mxu1 %v688_v4  ;;  %v691_v18 = vld [vmem:[%s853_s1 + $0x48] sm:$0xff]  ;;  %v197_v21 = vld [vmem:[%s191_s6] sm:$0xff] }
  0x12   : > { %427 = vmatpush.bf16.msra.mxu2 %v704_v5  ;;  %v683_v19 = vld [vmem:[%s853_s1 + $0x8] sm:$0xff]  ;;  %v198_v25 = vmax.f32 %v197_v21, 0.0  ;;  %v690_v26 = vld [vmem:[%s853_s1 + $0x40] sm:$0xff] }
  0x13   : > { %v216_v20 = vld [vmem:[%s191_s6 + $0x1] sm:$0xff]  ;;  %v716_v45 = vld [vmem:[%s855_s3] ss:$0 sm:$0xff] }
  0x14   : > { %286 = vmatpush.bf16.msra.mxu0 %v695_v6  ;;  %v699_v22 = vld [vmem:[%s853_s1 + $0x88] sm:$0xff]  ;;  %v217_v24 = vmax.f32 %v216_v20, 0.0  ;;  %v682_v27 = vld [vmem:[%s853_s1] sm:$0xff]  ;;  %v199_v31 = vpack.c.bf16 %v198_v25, %v198_v25 }
  0x15   : > { %347 = vmatpush.bf16.msra.mxu1 %v687_v7  ;;  %v358_v23 = vld [vmem:[%s191_s6 + $0x2] sm:$0xff] }
  0x16   : > { %428 = vmatpush.bf16.msra.mxu2 %v703_v8  ;;  %v359_v28 = vmax.f32 %v358_v23, 0.0  ;;  %v698_v29 = vld [vmem:[%s853_s1 + $0x80] sm:$0xff]  ;;  %v218_v30 = vpack.c.bf16 %v217_v24, %v217_v24  ;;  %v707_v33 = vld [vmem:[%s854_s2 + $0x8] sm:$0xff] }
  0x17   : > { %472 = vmatpush.bf16.msra.mxu3 %v707_v33  ;;  %v706_v34 = vld [vmem:[%s854_s2] sm:$0xff] }
  0x18   : > { %287 = vmatpush.bf16.msra.mxu0 %v694_v9  ;;  %v360_v32 = vpack.c.bf16 %v359_v28, %v359_v28 }
  0x19   : > { %348 = vmatpush.bf16.msra.mxu1 %v686_v10 }
  0x1a   : > { %429 = vmatpush.bf16.msra.mxu2 %v702_v11 }
  0x1b   : > { %473 = vmatpush.bf16.msra.mxu3 %v706_v34 }
  0x1c   : > { %288 = vmatpush.bf16.msra.mxu0 %v693_v12 }
  0x1d   : > { %349 = vmatpush.bf16.msra.mxu1 %v685_v13 }
  0x1e   : > { %430 = vmatpush.bf16.msra.mxu2 %v701_v14 }
  0x20   : > { %289 = vmatpush.bf16.msra.mxu0 %v692_v15 }
  0x21   : > { %350 = vmatpush.bf16.msra.mxu1 %v684_v16 }
  0x22   : > { %431 = vmatpush.bf16.msra.mxu2 %v700_v17 }
  0x24   : > { %290 = vmatpush.bf16.msra.mxu0 %v691_v18 }
  0x25   : > { %351 = vmatpush.bf16.msra.mxu1 %v683_v19 }
  0x26   : > { %432 = vmatpush.bf16.msra.mxu2 %v699_v22 }
  0x28   : > { %291 = vmatpush.bf16.msra.mxu0 %v690_v26 }
  0x29   : > { %352 = vmatpush.bf16.msra.mxu1 %v682_v27 }
  0x2a   : > { %433 = vmatpush.bf16.msra.mxu2 %v698_v29 }
  0x2b   : > { %292 = vmatmul.bf16.vlgmr.msra.gmra.mxu0 %v218_v30 }
  0x2c   : > { %353 = vmatmul.bf16.vlgmr.msra.gmra.mxu1 %v199_v31 }
  0x2d   : > { %434 = vmatmul.bf16.vlgmr.msra.gmra.mxu2 %v360_v32 }
  0xa8   : > { %v293_v35 = vpop.f32.mrf.mxu0 }
  0xa9   : > { %v354_v36 = vpop.f32.mrf.mxu1 }
  0xaa   : > { %v355_v37 = vadd.f32 %v354_v36, %v293_v35 }
  0xb0   : > { %v435_v38 = vpop.f32.mrf.mxu2  ;;  %v295_v40 = vpop.f32.mrf.mxu0 }
  0xb1   : > { %v439_v39 = vadd.f32 %v435_v38, %v355_v37  ;;  %v356_v41 = vpop.f32.mrf.mxu1 }
  0xb3   : > { %v440_v42 = vmax.f32 %v439_v39, 0.0 }
  0xb5   : > { %v441_v43 = vpack.c.bf16 %v440_v42, %v440_v42 }
  0xb7   : > { %678 = vmatmul.msk.bf16.vlgmr.msra.gmra.mxu3 %vm462_vm0, %v441_v43 }
  0xb8   : > { %v437_v44 = vpop.f32.mrf.mxu2 }
 0x13a   : > { %v475_v46 = vpop.f32.mrf.mxu3 }
 0x13b   : > { %v476_v47 = vadd.f32 %v716_v45, %v475_v46 }
 0x13d   : > { %v479_v48 = vadd.f32 %v476_v47, %v216_v20 }
 0x13f   : > { %480 = vst [vmem:[%s195_s30] sm:$0xff] %v479_v48 }
 0x142   : > { %v477_v49 = vpop.f32.mrf.mxu3 }
 0x143 PF: > { %s14_s15 = sadd.s32 1, %s723_s15  }
 0x144   : > { %p11_p4 = scmp.ge.s32.totalorder %s14_s15, 4  }
 0x146   :  { %13 = sbr.rel (!%p11_p4) target bundleno = 1 (0x1), region = 68 }

// kernel: tile.48
= control target key start
LH: loop header
LB: loop body
LE: loop exit
PB: predicated region body
PF: predicated region fallthrough
CT: control target
= control target key end

     0   :  { %s22_s0 = inlined_call_operand.vmem [shape: f32[32], index: 0, kind: input, shape index: {}]   ;;  %s23_s1 = inlined_call_operand.vmem [shape: f32[4,32], index: 1, kind: output, shape index: {}]  }
   0x1   :  { %v4_v0 = vld [vmem:[%s22_s0] ss:$0 sm:$0xff] }
   0x2   :  { %5 = vst [vmem:[%s23_s1] sm:$0xf] %v4_v0 }

// kernel: tile.49
= control target key start
LH: loop header
LB: loop body
LE: loop exit
PB: predicated region body
PF: predicated region fallthrough
CT: control target
= control target key end

     0   :  { %s37_s8 = smov 32   ;;  %s38_s9 = smov 64   ;;  %vm7_vm0 = vcmask 261120   ;;  %vm13_vm1 = vcmask 1048320   ;;  %vm19_vm2 = vcmask 785920   ;;  %vm25_vm3 = vcmask 523520   ;;  %s55_s0 = inlined_call_operand.vmem [shape: f32[4,32], index: 0, kind: input, shape index: {}]   ;;  %s56_s1 = inlined_call_operand.vmem [shape: f32[1,128], index: 1, kind: output, shape index: {}]  }
   0x1   :  { %v4_v0 = vld [vmem:[%s55_s0] sm:$0xf]  ;;  %s36_s0 = smov 96  }
   0x2   :  { %5 = vst [vmem:[#allocation1] sm:$0xf] %v4_v0 }
   0x9   :  { %v10_v1 = vld [vmem:[#allocation1 + $0x3] sm:$0x1]   ;;  %v22_v2 = vld [vmem:[#allocation1 + $0x1] sm:$0x1]   ;;  %v16_v3 = vld [vmem:[#allocation1 + $0x2] sm:$0x1]  }
   0xa   :  { %11 = vrot.lane.b32.xlu0 %v10_v1, %s36_s0  ;;  %23 = vrot.lane.b32.xlu1 %v22_v2, %s37_s8  ;;  %v6_v4 = vld [vmem:[#allocation1] sm:$0x1]  }
   0xb   :  { %8 = vst.msk [vmem:[#allocation0] sm:$0x1] %vm7_vm0, %v6_v4  }
  0x12   :  { %17 = vrot.lane.b32.xlu0 %v16_v3, %s38_s9 }
  0x7c   :  { %v12_v5 = vpop.permute.xlu0 %11   ;;  %v24_v6 = vpop.permute.xlu1 %23  }
  0x7d   :  { %14 = vst.msk [vmem:[#allocation0] sm:$0x1] %vm13_vm1, %v12_v5  }
  0x84   :  { %v18_v7 = vpop.permute.xlu0 %17  }
  0x85   :  { %20 = vst.msk [vmem:[#allocation0] sm:$0x1] %vm19_vm2, %v18_v7  }
  0x86   :  { %26 = vst.msk [vmem:[#allocation0] sm:$0x1] %vm25_vm3, %v24_v6  }
  0x8d   :  { %v29_v8 = vld [vmem:[#allocation0] sm:$0x1] }
  0x8e   :  { %32 = vst [vmem:[%s56_s1] sm:$0x1] %v29_v8 }

// kernel: encoder_forward.9
= control target key start
LH: loop header
LB: loop body
LE: loop exit
PB: predicated region body
PF: predicated region fallthrough
CT: control target
= control target key end

     0   :  { %s866_s15 = smov 0   ;;  %s993_s0 = inlined_call_operand.vmem [shape: f32[2,5,128], index: 0, kind: input, shape index: {}]   ;;  %s994_s1 = inlined_call_operand.vmem [shape: f32[2,5,128], index: 1, kind: input, shape index: {}]   ;;  %s995_s2 = inlined_call_operand.vmem [shape: bf16[4,128,128], index: 2, kind: input, shape index: {}]   ;;  %s996_s3 = inlined_call_operand.vmem [shape: f32[1,128], index: 3, kind: input, shape index: {}]   ;;  %s997_s4 = inlined_call_operand.vmem [shape: f32[2,4,128], index: 4, kind: output, shape index: {}]  }
   0x1 LB: > { %s606_s16 = sadd.s32 4294967295, %s839_s15   ;;  %p610_p0 = scmp.ge.s32.totalorder %s839_s15, 1  ;;  %s839_s15 = sphi %s866_s15, %s14_s15  }
   0x2   : > { %p170_p1 = scmp.lt.s32.totalorder %s839_s15, 3 }
   0x4   : > { %p171_p2 = pnand %p610_p0, %p170_p1 }
   0x5   : > { %p198_p3 = scmp.lt.s32.totalorder (!%p171_p2), %s606_s16, 1 }
   0x6   : > { %174 = sbr.rel (%p171_p2) target bundleno = 186 (0xba), region = 36 }
   0xb   : > { %v807_v0 = vld [vmem:[%s995_s2 + $0x78] sm:$0xff]  ;;  %v806_v4 = vld [vmem:[%s995_s2 + $0x70] sm:$0xff]  ;;  %v805_v8 = vld [vmem:[%s995_s2 + $0x68] sm:$0xff]  ;;  %s999_s16 = smov (!%p198_p3, %s606_s16), 1 }
   0xc   : > { %v799_v1 = vld [vmem:[%s995_s2 + $0x38] sm:$0xff]  ;;  %297 = vmatpush.bf16.msra.mxu0 %v807_v0  ;;  %v798_v5 = vld [vmem:[%s995_s2 + $0x30] sm:$0xff]  ;;  %v797_v9 = vld [vmem:[%s995_s2 + $0x28] sm:$0xff]  ;;  %s611_s7 = sshll.u32 %s999_s16, 3  ;;  %s613_s14 = sshll.u32 %s999_s16, 2 }
   0xd   : > { %v815_v2 = vld [vmem:[%s995_s2 + $0xb8] sm:$0xff]  ;;  %358 = vmatpush.bf16.msra.mxu1 %v799_v1  ;;  %v814_v6 = vld [vmem:[%s995_s2 + $0xb0] sm:$0xff]  ;;  %v813_v10 = vld [vmem:[%s995_s2 + $0xa8] sm:$0xff]  ;;  %s205_s20 = scalar_lea.vmem %s994_s1, %s611_s7  ;;  %s201_s23 = scalar_lea.vmem %s993_s0, %s611_s7 }
   0xe   : > { %v823_v3 = vld [vmem:[%s995_s2 + $0xf8] sm:$0xff]  ;;  %439 = vmatpush.bf16.msra.mxu2 %v815_v2  ;;  %v822_v7 = vld [vmem:[%s995_s2 + $0xf0] sm:$0xff]  ;;  %v821_v11 = vld [vmem:[%s995_s2 + $0xe8] sm:$0xff]  ;;  %s209_s21 = scalar_lea.vmem %s997_s4, %s613_s14 }
   0xf   : > { %521 = vmatpush.bf16.msra.mxu3 %v823_v3  ;;  %v804_v12 = vld [vmem:[%s995_s2 + $0x60] sm:$0xff]  ;;  %v803_v16 = vld [vmem:[%s995_s2 + $0x58] sm:$0xff]  ;;  %v802_v20 = vld [vmem:[%s995_s2 + $0x50] sm:$0xff] }
  0x10   : > { %298 = vmatpush.bf16.msra.mxu0 %v806_v4  ;;  %v796_v13 = vld [vmem:[%s995_s2 + $0x20] sm:$0xff]  ;;  %v795_v17 = vld [vmem:[%s995_s2 + $0x18] sm:$0xff]  ;;  %v794_v21 = vld [vmem:[%s995_s2 + $0x10] sm:$0xff] }
  0x11   : > { %359 = vmatpush.bf16.msra.mxu1 %v798_v5  ;;  %v812_v14 = vld [vmem:[%s995_s2 + $0xa0] sm:$0xff]  ;;  %v811_v18 = vld [vmem:[%s995_s2 + $0x98] sm:$0xff]  ;;  %v810_v22 = vld [vmem:[%s995_s2 + $0x90] sm:$0xff] }
  0x12   : > { %440 = vmatpush.bf16.msra.mxu2 %v814_v6  ;;  %v820_v15 = vld [vmem:[%s995_s2 + $0xe0] sm:$0xff]  ;;  %v819_v19 = vld [vmem:[%s995_s2 + $0xd8] sm:$0xff]  ;;  %v818_v23 = vld [vmem:[%s995_s2 + $0xd0] sm:$0xff] }
  0x13   : > { %522 = vmatpush.bf16.msra.mxu3 %v822_v7  ;;  %v801_v24 = vld [vmem:[%s995_s2 + $0x48] sm:$0xff]  ;;  %v229_v27 = vld [vmem:[%s205_s20] sm:$0xf] }
  0x14   : > { %299 = vmatpush.bf16.msra.mxu0 %v805_v8  ;;  %v793_v25 = vld [vmem:[%s995_s2 + $0x8] sm:$0xff]  ;;  %v210_v28 = vld [vmem:[%s201_s23] sm:$0xf]  ;;  %v230_v32 = vmax.f32 %v229_v27, 0.0 }
  0x15   : > { %360 = vmatpush.bf16.msra.mxu1 %v797_v9  ;;  %v809_v26 = vld [vmem:[%s995_s2 + $0x88] sm:$0xff]  ;;  %v371_v30 = vld [vmem:[%s201_s23 + $0x1] sm:$0xf]  ;;  %v211_v33 = vmax.f32 %v210_v28, 0.0  ;;  %v832_v50 = vld [vmem:[%s996_s3] ss:$0 sm:$0xff] }
  0x16   : > { %441 = vmatpush.bf16.msra.mxu2 %v813_v10  ;;  %v817_v29 = vld [vmem:[%s995_s2 + $0xc8] sm:$0xff]  ;;  %v453_v31 = vld [vmem:[%s205_s20 + $0x1] sm:$0xf]  ;;  %v372_v36 = vmax.f32 %v371_v30, 0.0  ;;  %v231_v40 = vpack.c.bf16 %v230_v32, %v230_v32 }
  0x17   : > { %523 = vmatpush.bf16.msra.mxu3 %v821_v11  ;;  %v800_v34 = vld [vmem:[%s995_s2 + $0x40] sm:$0xff]  ;;  %v454_v37 = vmax.f32 %v453_v31, 0.0  ;;  %v212_v41 = vpack.c.bf16 %v211_v33, %v211_v33 }
  0x18   : > { %300 = vmatpush.bf16.msra.mxu0 %v804_v12  ;;  %v792_v35 = vld [vmem:[%s995_s2] sm:$0xff]  ;;  %v373_v42 = vpack.c.bf16 %v372_v36, %v372_v36 }
  0x19   : > { %361 = vmatpush.bf16.msra.mxu1 %v796_v13  ;;  %v808_v38 = vld [vmem:[%s995_s2 + $0x80] sm:$0xff]  ;;  %v455_v43 = vpack.c.bf16 %v454_v37, %v454_v37 }
  0x1a   : > { %442 = vmatpush.bf16.msra.mxu2 %v812_v14  ;;  %v816_v39 = vld [vmem:[%s995_s2 + $0xc0] sm:$0xff] }
  0x1b   : > { %524 = vmatpush.bf16.msra.mxu3 %v820_v15 }
  0x1c   : > { %301 = vmatpush.bf16.msra.mxu0 %v803_v16 }
  0x1d   : > { %362 = vmatpush.bf16.msra.mxu1 %v795_v17 }
  0x1e   : > { %443 = vmatpush.bf16.msra.mxu2 %v811_v18 }
  0x1f   : > { %525 = vmatpush.bf16.msra.mxu3 %v819_v19 }
  0x20   : > { %302 = vmatpush.bf16.msra.mxu0 %v802_v20 }
  0x21   : > { %363 = vmatpush.bf16.msra.mxu1 %v794_v21 }
  0x22   : > { %444 = vmatpush.bf16.msra.mxu2 %v810_v22 }
  0x23   : > { %526 = vmatpush.bf16.msra.mxu3 %v818_v23 }
  0x24   : > { %303 = vmatpush.bf16.msra.mxu0 %v801_v24 }
  0x25   : > { %364 = vmatpush.bf16.msra.mxu1 %v793_v25 }
  0x26   : > { %445 = vmatpush.bf16.msra.mxu2 %v809_v26 }
  0x27   : > { %527 = vmatpush.bf16.msra.mxu3 %v817_v29 }
  0x28   : > { %304 = vmatpush.bf16.msra.mxu0 %v800_v34 }
  0x29   : > { %365 = vmatpush.bf16.msra.mxu1 %v792_v35 }
  0x2a   : > { %446 = vmatpush.bf16.msra.mxu2 %v808_v38 }
  0x2b   : > { %528 = vmatpush.bf16.msra.mxu3 %v816_v39  ;;  %305 = vmatmul.bf16.vlgmr.msra.gmra.mxu0 %v231_v40 }
  0x2c   : > { %366 = vmatmul.bf16.vlgmr.msra.gmra.mxu1 %v212_v41 }
  0x2d   : > { %447 = vmatmul.bf16.vlgmr.msra.gmra.mxu2 %v373_v42 }
  0x2e   : > { %529 = vmatmul.bf16.vlgmr.msra.gmra.mxu3 %v455_v43 }
  0xa8   : > { %v306_v44 = vpop.f32.mrf.mxu0 }
  0xa9   : > { %v367_v45 = vpop.f32.mrf.mxu1 }
  0xaa   : > { %v368_v46 = vadd.f32 %v367_v45, %v306_v44 }
  0xb0   : > { %v448_v47 = vpop.f32.mrf.mxu2  ;;  %v308_v51 = vpop.f32.mrf.mxu0 }
  0xb1   : > { %v530_v48 = vpop.f32.mrf.mxu3  ;;  %v452_v49 = vadd.f32 %v448_v47, %v368_v46  ;;  %v369_v52 = vpop.f32.mrf.mxu1 }
  0xb3   : > { %v534_v53 = vadd.f32 %v530_v48, %v452_v49 }
  0xb5   : > { %v539_v54 = vadd.f32 %v832_v50, %v534_v53 }
  0xb7   : > { %540 = vst [vmem:[%s209_s21] sm:$0xf] %v539_v54 }
  0xb8   : > { %v450_v55 = vpop.f32.mrf.mxu2 }
  0xb9   : > { %v532_v56 = vpop.f32.mrf.mxu3 }
  0xba PF: > { %s14_s15 = sadd.s32 1, %s839_s15  }
  0xbb   : > { %p11_p4 = scmp.ge.s32.totalorder %s14_s15, 4  }
  0xbd   :  { %13 = sbr.rel (!%p11_p4) target bundleno = 1 (0x1), region = 72 }

// kernel: encoder_forward.10
= control target key start
LH: loop header
LB: loop body
LE: loop exit
PB: predicated region body
PF: predicated region fallthrough
CT: control target
= control target key end

     0   :  { %s745_s15 = smov 0   ;;  %s847_s0 = inlined_call_operand.vmem [shape: f32[2,6,128], index: 0, kind: input, shape index: {}]   ;;  %s848_s1 = inlined_call_operand.vmem [shape: bf16[3,128,32], index: 1, kind: input, shape index: {}]   ;;  %s849_s2 = inlined_call_operand.vmem [shape: bf16[32,128], index: 2, kind: input, shape index: {}]   ;;  %s850_s3 = inlined_call_operand.vmem [shape: f32[1,128], index: 3, kind: input, shape index: {}]   ;;  %s851_s4 = inlined_call_operand.vmem [shape: f32[2,4,128], index: 4, kind: output, shape index: {}]  }
   0x1 LB: > { %s531_s16 = sadd.s32 4294967295, %s718_s15   ;;  %p535_p0 = scmp.ge.s32.totalorder %s718_s15, 1  ;;  %s718_s15 = sphi %s745_s15, %s14_s15  }
   0x2   : > { %p161_p1 = scmp.lt.s32.totalorder %s718_s15, 3 }
   0x4   : > { %p162_p2 = pnand %p535_p0, %p161_p1 }
   0x5   : > { %p185_p3 = scmp.lt.s32.totalorder (!%p162_p2), %s531_s16, 1 }
   0x6   : > { %165 = sbr.rel (%p162_p2) target bundleno = 323 (0x143), region = 36 }
   0xb   : > { %v692_v0 = vld [vmem:[%s848_s1 + $0x78] sm:$0xff]  ;;  %v691_v3 = vld [vmem:[%s848_s1 + $0x70] sm:$0xff]  ;;  %v690_v6 = vld [vmem:[%s848_s1 + $0x68] sm:$0xff]  ;;  %s853_s16 = smov (!%p185_p3, %s531_s16), 1  ;;  %vm459_vm0 = vcmask 261120  }
   0xc   : > { %v684_v1 = vld [vmem:[%s848_s1 + $0x38] sm:$0xff]  ;;  %281 = vmatpush.bf16.msra.mxu0 %v692_v0  ;;  %v683_v4 = vld [vmem:[%s848_s1 + $0x30] sm:$0xff]  ;;  %v682_v7 = vld [vmem:[%s848_s1 + $0x28] sm:$0xff]  ;;  %s536_s23 = sshll.u32 %s853_s16, 3  ;;  %s537_s27 = sshll.u32 %s853_s16, 2 }
   0xd   : > { %v700_v2 = vld [vmem:[%s848_s1 + $0xb8] sm:$0xff]  ;;  %342 = vmatpush.bf16.msra.mxu1 %v684_v1  ;;  %v699_v5 = vld [vmem:[%s848_s1 + $0xb0] sm:$0xff]  ;;  %v698_v8 = vld [vmem:[%s848_s1 + $0xa8] sm:$0xff]  ;;  %s188_s6 = scalar_lea.vmem %s847_s0, %s536_s23  ;;  %s192_s30 = scalar_lea.vmem %s851_s4, %s537_s27 }
   0xe   : > { %423 = vmatpush.bf16.msra.mxu2 %v700_v2  ;;  %v689_v9 = vld [vmem:[%s848_s1 + $0x60] sm:$0xff]  ;;  %v688_v12 = vld [vmem:[%s848_s1 + $0x58] sm:$0xff]  ;;  %v687_v15 = vld [vmem:[%s848_s1 + $0x50] sm:$0xff] }
   0xf   : > { %v681_v10 = vld [vmem:[%s848_s1 + $0x20] sm:$0xff]  ;;  %v680_v13 = vld [vmem:[%s848_s1 + $0x18] sm:$0xff]  ;;  %v679_v16 = vld [vmem:[%s848_s1 + $0x10] sm:$0xff] }
  0x10   : > { %282 = vmatpush.bf16.msra.mxu0 %v691_v3  ;;  %v697_v11 = vld [vmem:[%s848_s1 + $0xa0] sm:$0xff]  ;;  %v696_v14 = vld [vmem:[%s848_s1 + $0x98] sm:$0xff]  ;;  %v695_v17 = vld [vmem:[%s848_s1 + $0x90] sm:$0xff] }
  0x11   : > { %343 = vmatpush.bf16.msra.mxu1 %v683_v4  ;;  %v686_v18 = vld [vmem:[%s848_s1 + $0x48] sm:$0xff]  ;;  %v213_v20 = vld [vmem:[%s188_s6 + $0x1] sm:$0xf]  ;;  %v711_v45 = vld [vmem:[%s850_s3] ss:$0 sm:$0xff] }
  0x12   : > { %424 = vmatpush.bf16.msra.mxu2 %v699_v5  ;;  %v678_v19 = vld [vmem:[%s848_s1 + $0x8] sm:$0xff]  ;;  %v194_v21 = vld [vmem:[%s188_s6] sm:$0xf]  ;;  %v214_v24 = vmax.f32 %v213_v20, 0.0 }
  0x13   : > { %v694_v22 = vld [vmem:[%s848_s1 + $0x88] sm:$0xff]  ;;  %v355_v23 = vld [vmem:[%s188_s6 + $0x2] sm:$0xf]  ;;  %v195_v25 = vmax.f32 %v194_v21, 0.0 }
  0x14   : > { %283 = vmatpush.bf16.msra.mxu0 %v690_v6  ;;  %v685_v26 = vld [vmem:[%s848_s1 + $0x40] sm:$0xff]  ;;  %v356_v28 = vmax.f32 %v355_v23, 0.0  ;;  %v215_v30 = vpack.c.bf16 %v214_v24, %v214_v24  ;;  %v702_v33 = vld [vmem:[%s849_s2 + $0x8] sm:$0xff] }
  0x15   : > { %344 = vmatpush.bf16.msra.mxu1 %v682_v7  ;;  %v677_v27 = vld [vmem:[%s848_s1] sm:$0xff]  ;;  %v196_v31 = vpack.c.bf16 %v195_v25, %v195_v25  ;;  %469 = vmatpush.bf16.msra.mxu3 %v702_v33 }
  0x16   : > { %425 = vmatpush.bf16.msra.mxu2 %v698_v8  ;;  %v693_v29 = vld [vmem:[%s848_s1 + $0x80] sm:$0xff]  ;;  %v357_v32 = vpack.c.bf16 %v356_v28, %v356_v28 }
  0x17   : > { %v701_v34 = vld [vmem:[%s849_s2] sm:$0xff] }
  0x18   : > { %284 = vmatpush.bf16.msra.mxu0 %v689_v9 }
  0x19   : > { %345 = vmatpush.bf16.msra.mxu1 %v681_v10  ;;  %470 = vmatpush.bf16.msra.mxu3 %v701_v34 }
  0x1a   : > { %426 = vmatpush.bf16.msra.mxu2 %v697_v11 }
  0x1c   : > { %285 = vmatpush.bf16.msra.mxu0 %v688_v12 }
  0x1d   : > { %346 = vmatpush.bf16.msra.mxu1 %v680_v13 }
  0x1e   : > { %427 = vmatpush.bf16.msra.mxu2 %v696_v14 }
  0x20   : > { %286 = vmatpush.bf16.msra.mxu0 %v687_v15 }
  0x21   : > { %347 = vmatpush.bf16.msra.mxu1 %v679_v16 }
  0x22   : > { %428 = vmatpush.bf16.msra.mxu2 %v695_v17 }
  0x24   : > { %287 = vmatpush.bf16.msra.mxu0 %v686_v18 }
  0x25   : > { %348 = vmatpush.bf16.msra.mxu1 %v678_v19 }
  0x26   : > { %429 = vmatpush.bf16.msra.mxu2 %v694_v22 }
  0x28   : > { %288 = vmatpush.bf16.msra.mxu0 %v685_v26 }
  0x29   : > { %349 = vmatpush.bf16.msra.mxu1 %v677_v27 }
  0x2a   : > { %430 = vmatpush.bf16.msra.mxu2 %v693_v29 }
  0x2b   : > { %289 = vmatmul.bf16.vlgmr.msra.gmra.mxu0 %v215_v30 }
  0x2c   : > { %350 = vmatmul.bf16.vlgmr.msra.gmra.mxu1 %v196_v31 }
  0x2d   : > { %431 = vmatmul.bf16.vlgmr.msra.gmra.mxu2 %v357_v32 }
  0xa8   : > { %v290_v35 = vpop.f32.mrf.mxu0 }
  0xa9   : > { %v351_v36 = vpop.f32.mrf.mxu1 }
  0xaa   : > { %v352_v37 = vadd.f32 %v351_v36, %v290_v35 }
  0xb0   : > { %v432_v38 = vpop.f32.mrf.mxu2  ;;  %v292_v40 = vpop.f32.mrf.mxu0 }
  0xb1   : > { %v436_v39 = vadd.f32 %v432_v38, %v352_v37  ;;  %v353_v41 = vpop.f32.mrf.mxu1 }
  0xb3   : > { %v437_v42 = vmax.f32 %v436_v39, 0.0 }
  0xb5   : > { %v438_v43 = vpack.c.bf16 %v437_v42, %v437_v42 }
  0xb7   : > { %674 = vmatmul.msk.bf16.vlgmr.msra.gmra.mxu3 %vm459_vm0, %v438_v43 }
  0xb8   : > { %v434_v44 = vpop.f32.mrf.mxu2 }
 0x13a   : > { %v472_v46 = vpop.f32.mrf.mxu3 }
 0x13b   : > { %v473_v47 = vadd.f32 %v711_v45, %v472_v46 }
 0x13d   : > { %v476_v48 = vadd.f32 %v473_v47, %v213_v20 }
 0x13f   : > { %477 = vst [vmem:[%s192_s30] sm:$0xf] %v476_v48 }
 0x142   : > { %v474_v49 = vpop.f32.mrf.mxu3 }
 0x143 PF: > { %s14_s15 = sadd.s32 1, %s718_s15  }
 0x144   : > { %p11_p4 = scmp.ge.s32.totalorder %s14_s15, 4  }
 0x146   :  { %13 = sbr.rel (!%p11_p4) target bundleno = 1 (0x1), region = 68 }

// kernel: encoder_forward.11
= control target key start
LH: loop header
LB: loop body
LE: loop exit
PB: predicated region body
PF: predicated region fallthrough
CT: control target
= control target key end

     0   :  { %s666_s12 = smov 0   ;;  %s762_s0 = inlined_call_operand.vmem [shape: f32[2,6,128], index: 0, kind: input, shape index: {}]   ;;  %s763_s1 = inlined_call_operand.vmem [shape: bf16[3,128,128], index: 1, kind: input, shape index: {}]   ;;  %s764_s2 = inlined_call_operand.vmem [shape: f32[1,128], index: 2, kind: input, shape index: {}]   ;;  %s765_s3 = inlined_call_operand.vmem [shape: f32[2,4,128], index: 3, kind: output, shape index: {}]  }
   0x1 LB: > { %s468_s13 = sadd.s32 4294967295, %s644_s12   ;;  %p472_p0 = scmp.ge.s32.totalorder %s644_s12, 1  ;;  %s644_s12 = sphi %s666_s12, %s13_s12  }
   0x2   : > { %p136_p1 = scmp.lt.s32.totalorder %s644_s12, 3 }
   0x4   : > { %p137_p2 = pnand %p472_p0, %p136_p1 }
   0x5   : > { %p158_p3 = scmp.lt.s32.totalorder (!%p137_p2), %s468_s13, 1 }
   0x6   : > { %140 = sbr.rel (%p137_p2) target bundleno = 185 (0xb9), region = 32 }
   0xb   : > { %v620_v0 = vld [vmem:[%s763_s1 + $0x78] sm:$0xff]  ;;  %v619_v3 = vld [vmem:[%s763_s1 + $0x70] sm:$0xff]  ;;  %v618_v6 = vld [vmem:[%s763_s1 + $0x68] sm:$0xff]  ;;  %s767_s13 = smov (!%p158_p3, %s468_s13), 1 }
   0xc   : > { %v612_v1 = vld [vmem:[%s763_s1 + $0x38] sm:$0xff]  ;;  %253 = vmatpush.bf16.msra.mxu0 %v620_v0  ;;  %v611_v4 = vld [vmem:[%s763_s1 + $0x30] sm:$0xff]  ;;  %v610_v7 = vld [vmem:[%s763_s1 + $0x28] sm:$0xff]  ;;  %s473_s19 = sshll.u32 %s767_s13, 3  ;;  %s474_s16 = sshll.u32 %s767_s13, 2 }
   0xd   : > { %v628_v2 = vld [vmem:[%s763_s1 + $0xb8] sm:$0xff]  ;;  %314 = vmatpush.bf16.msra.mxu1 %v612_v1  ;;  %v627_v5 = vld [vmem:[%s763_s1 + $0xb0] sm:$0xff]  ;;  %v626_v8 = vld [vmem:[%s763_s1 + $0xa8] sm:$0xff]  ;;  %s161_s28 = scalar_lea.vmem %s762_s0, %s473_s19  ;;  %s165_s21 = scalar_lea.vmem %s765_s3, %s474_s16 }
   0xe   : > { %395 = vmatpush.bf16.msra.mxu2 %v628_v2  ;;  %v617_v9 = vld [vmem:[%s763_s1 + $0x60] sm:$0xff]  ;;  %v616_v12 = vld [vmem:[%s763_s1 + $0x58] sm:$0xff]  ;;  %v615_v15 = vld [vmem:[%s763_s1 + $0x50] sm:$0xff] }
   0xf   : > { %v609_v10 = vld [vmem:[%s763_s1 + $0x20] sm:$0xff]  ;;  %v608_v13 = vld [vmem:[%s763_s1 + $0x18] sm:$0xff]  ;;  %v607_v16 = vld [vmem:[%s763_s1 + $0x10] sm:$0xff] }
  0x10   : > { %254 = vmatpush.bf16.msra.mxu0 %v619_v3  ;;  %v625_v11 = vld [vmem:[%s763_s1 + $0xa0] sm:$0xff]  ;;  %v624_v14 = vld [vmem:[%s763_s1 + $0x98] sm:$0xff]  ;;  %v623_v17 = vld [vmem:[%s763_s1 + $0x90] sm:$0xff] }
  0x11   : > { %315 = vmatpush.bf16.msra.mxu1 %v611_v4  ;;  %v614_v18 = vld [vmem:[%s763_s1 + $0x48] sm:$0xff]  ;;  %v185_v20 = vld [vmem:[%s161_s28 + $0x1] sm:$0xf]  ;;  %v637_v36 = vld [vmem:[%s764_s2] ss:$0 sm:$0xff] }
  0x12   : > { %396 = vmatpush.bf16.msra.mxu2 %v627_v5  ;;  %v606_v19 = vld [vmem:[%s763_s1 + $0x8] sm:$0xff]  ;;  %v166_v21 = vld [vmem:[%s161_s28] sm:$0xf]  ;;  %v186_v24 = vmax.f32 %v185_v20, 0.0 }
  0x13   : > { %v622_v22 = vld [vmem:[%s763_s1 + $0x88] sm:$0xff]  ;;  %v327_v23 = vld [vmem:[%s161_s28 + $0x2] sm:$0xf]  ;;  %v167_v25 = vmax.f32 %v166_v21, 0.0 }
  0x14   : > { %255 = vmatpush.bf16.msra.mxu0 %v618_v6  ;;  %v613_v26 = vld [vmem:[%s763_s1 + $0x40] sm:$0xff]  ;;  %v328_v28 = vmax.f32 %v327_v23, 0.0  ;;  %v187_v30 = vpack.c.bf16 %v186_v24, %v186_v24 }
  0x15   : > { %316 = vmatpush.bf16.msra.mxu1 %v610_v7  ;;  %v605_v27 = vld [vmem:[%s763_s1] sm:$0xff]  ;;  %v168_v31 = vpack.c.bf16 %v167_v25, %v167_v25 }
  0x16   : > { %397 = vmatpush.bf16.msra.mxu2 %v626_v8  ;;  %v621_v29 = vld [vmem:[%s763_s1 + $0x80] sm:$0xff]  ;;  %v329_v32 = vpack.c.bf16 %v328_v28, %v328_v28 }
  0x18   : > { %256 = vmatpush.bf16.msra.mxu0 %v617_v9 }
  0x19   : > { %317 = vmatpush.bf16.msra.mxu1 %v609_v10 }
  0x1a   : > { %398 = vmatpush.bf16.msra.mxu2 %v625_v11 }
  0x1c   : > { %257 = vmatpush.bf16.msra.mxu0 %v616_v12 }
  0x1d   : > { %318 = vmatpush.bf16.msra.mxu1 %v608_v13 }
  0x1e   : > { %399 = vmatpush.bf16.msra.mxu2 %v624_v14 }
  0x20   : > { %258 = vmatpush.bf16.msra.mxu0 %v615_v15 }
  0x21   : > { %319 = vmatpush.bf16.msra.mxu1 %v607_v16 }
  0x22   : > { %400 = vmatpush.bf16.msra.mxu2 %v623_v17 }
  0x24   : > { %259 = vmatpush.bf16.msra.mxu0 %v614_v18 }
  0x25   : > { %320 = vmatpush.bf16.msra.mxu1 %v606_v19 }
  0x26   : > { %401 = vmatpush.bf16.msra.mxu2 %v622_v22 }
  0x28   : > { %260 = vmatpush.bf16.msra.mxu0 %v613_v26 }
  0x29   : > { %321 = vmatpush.bf16.msra.mxu1 %v605_v27 }
  0x2a   : > { %402 = vmatpush.bf16.msra.mxu2 %v621_v29 }
  0x2b   : > { %261 = vmatmul.bf16.vlgmr.msra.gmra.mxu0 %v187_v30 }
  0x2c   : > { %322 = vmatmul.bf16.vlgmr.msra.gmra.mxu1 %v168_v31 }
  0x2d   : > { %403 = vmatmul.bf16.vlgmr.msra.gmra.mxu2 %v329_v32 }
  0xa8   : > { %v262_v33 = vpop.f32.mrf.mxu0 }
  0xa9   : > { %v323_v34 = vpop.f32.mrf.mxu1 }
  0xaa   : > { %v324_v35 = vadd.f32 %v323_v34, %v262_v33 }
  0xb0   : > { %v404_v37 = vpop.f32.mrf.mxu2  ;;  %v264_v39 = vpop.f32.mrf.mxu0 }
  0xb1   : > { %v408_v38 = vadd.f32 %v404_v37, %v324_v35  ;;  %v325_v40 = vpop.f32.mrf.mxu1 }
  0xb3   : > { %v413_v41 = vadd.f32 %v637_v36, %v408_v38 }
  0xb5   : > { %414 = vst [vmem:[%s165_s21] sm:$0xf] %v413_v41 }
  0xb8   : > { %v406_v42 = vpop.f32.mrf.mxu2 }
  0xb9 PF: > { %s13_s12 = sadd.s32 1, %s644_s12  }
  0xba   : > { %p10_p4 = scmp.ge.s32.totalorder %s13_s12, 4  }
  0xbc   :  { %12 = sbr.rel (!%p10_p4) target bundleno = 1 (0x1), region = 64 }

// kernel: encoder_forward.13
= control target key start
LH: loop header
LB: loop body
LE: loop exit
PB: predicated region body
PF: predicated region fallthrough
CT: control target
= control target key end

     0   :  { %s746_s15 = smov 0   ;;  %s848_s0 = inlined_call_operand.vmem [shape: f32[2,6,128], index: 0, kind: input, shape index: {}]   ;;  %s849_s1 = inlined_call_operand.vmem [shape: bf16[3,128,32], index: 1, kind: input, shape index: {}]   ;;  %s850_s2 = inlined_call_operand.vmem [shape: bf16[32,128], index: 2, kind: input, shape index: {}]   ;;  %s851_s3 = inlined_call_operand.vmem [shape: f32[1,128], index: 3, kind: input, shape index: {}]   ;;  %s852_s4 = inlined_call_operand.vmem [shape: f32[2,4,128], index: 4, kind: output, shape index: {}]  }
   0x1 LB: > { %s532_s16 = sadd.s32 4294967295, %s719_s15   ;;  %p536_p0 = scmp.ge.s32.totalorder %s719_s15, 1  ;;  %s719_s15 = sphi %s746_s15, %s14_s15  }
   0x2   : > { %p161_p1 = scmp.lt.s32.totalorder %s719_s15, 3 }
   0x4   : > { %p162_p2 = pnand %p536_p0, %p161_p1 }
   0x5   : > { %p185_p3 = scmp.lt.s32.totalorder (!%p162_p2), %s532_s16, 1 }
   0x6   : > { %165 = sbr.rel (%p162_p2) target bundleno = 323 (0x143), region = 36 }
   0xb   : > { %v693_v0 = vld [vmem:[%s849_s1 + $0x78] sm:$0xff]  ;;  %v692_v3 = vld [vmem:[%s849_s1 + $0x70] sm:$0xff]  ;;  %v691_v6 = vld [vmem:[%s849_s1 + $0x68] sm:$0xff]  ;;  %s854_s16 = smov (!%p185_p3, %s532_s16), 1  ;;  %vm459_vm0 = vcmask 261120  }
   0xc   : > { %v685_v1 = vld [vmem:[%s849_s1 + $0x38] sm:$0xff]  ;;  %281 = vmatpush.bf16.msra.mxu0 %v693_v0  ;;  %v684_v4 = vld [vmem:[%s849_s1 + $0x30] sm:$0xff]  ;;  %v683_v7 = vld [vmem:[%s849_s1 + $0x28] sm:$0xff]  ;;  %s537_s23 = sshll.u32 %s854_s16, 3  ;;  %s538_s27 = sshll.u32 %s854_s16, 2 }
   0xd   : > { %v701_v2 = vld [vmem:[%s849_s1 + $0xb8] sm:$0xff]  ;;  %342 = vmatpush.bf16.msra.mxu1 %v685_v1  ;;  %v700_v5 = vld [vmem:[%s849_s1 + $0xb0] sm:$0xff]  ;;  %v699_v8 = vld [vmem:[%s849_s1 + $0xa8] sm:$0xff]  ;;  %s188_s6 = scalar_lea.vmem %s848_s0, %s537_s23  ;;  %s192_s30 = scalar_lea.vmem %s852_s4, %s538_s27 }
   0xe   : > { %423 = vmatpush.bf16.msra.mxu2 %v701_v2  ;;  %v690_v9 = vld [vmem:[%s849_s1 + $0x60] sm:$0xff]  ;;  %v689_v12 = vld [vmem:[%s849_s1 + $0x58] sm:$0xff]  ;;  %v688_v15 = vld [vmem:[%s849_s1 + $0x50] sm:$0xff] }
   0xf   : > { %v682_v10 = vld [vmem:[%s849_s1 + $0x20] sm:$0xff]  ;;  %v681_v13 = vld [vmem:[%s849_s1 + $0x18] sm:$0xff]  ;;  %v680_v16 = vld [vmem:[%s849_s1 + $0x10] sm:$0xff] }
  0x10   : > { %282 = vmatpush.bf16.msra.mxu0 %v692_v3  ;;  %v698_v11 = vld [vmem:[%s849_s1 + $0xa0] sm:$0xff]  ;;  %v697_v14 = vld [vmem:[%s849_s1 + $0x98] sm:$0xff]  ;;  %v696_v17 = vld [vmem:[%s849_s1 + $0x90] sm:$0xff] }
  0x11   : > { %343 = vmatpush.bf16.msra.mxu1 %v684_v4  ;;  %v687_v18 = vld [vmem:[%s849_s1 + $0x48] sm:$0xff]  ;;  %v213_v20 = vld [vmem:[%s188_s6 + $0x1] sm:$0xf]  ;;  %v712_v45 = vld [vmem:[%s851_s3] ss:$0 sm:$0xff] }
  0x12   : > { %424 = vmatpush.bf16.msra.mxu2 %v700_v5  ;;  %v679_v19 = vld [vmem:[%s849_s1 + $0x8] sm:$0xff]  ;;  %v194_v21 = vld [vmem:[%s188_s6] sm:$0xf]  ;;  %v214_v24 = vmax.f32 %v213_v20, 0.0 }
  0x13   : > { %v695_v22 = vld [vmem:[%s849_s1 + $0x88] sm:$0xff]  ;;  %v355_v23 = vld [vmem:[%s188_s6 + $0x2] sm:$0xf]  ;;  %v195_v25 = vmax.f32 %v194_v21, 0.0 }
  0x14   : > { %283 = vmatpush.bf16.msra.mxu0 %v691_v6  ;;  %v686_v26 = vld [vmem:[%s849_s1 + $0x40] sm:$0xff]  ;;  %v356_v28 = vmax.f32 %v355_v23, 0.0  ;;  %v215_v30 = vpack.c.bf16 %v214_v24, %v214_v24  ;;  %v703_v33 = vld [vmem:[%s850_s2 + $0x8] sm:$0xff] }
  0x15   : > { %344 = vmatpush.bf16.msra.mxu1 %v683_v7  ;;  %v678_v27 = vld [vmem:[%s849_s1] sm:$0xff]  ;;  %v196_v31 = vpack.c.bf16 %v195_v25, %v195_v25  ;;  %469 = vmatpush.bf16.msra.mxu3 %v703_v33 }
  0x16   : > { %425 = vmatpush.bf16.msra.mxu2 %v699_v8  ;;  %v694_v29 = vld [vmem:[%s849_s1 + $0x80] sm:$0xff]  ;;  %v357_v32 = vpack.c.bf16 %v356_v28, %v356_v28 }
  0x17   : > { %v702_v34 = vld [vmem:[%s850_s2] sm:$0xff] }
  0x18   : > { %284 = vmatpush.bf16.msra.mxu0 %v690_v9 }
  0x19   : > { %345 = vmatpush.bf16.msra.mxu1 %v682_v10  ;;  %470 = vmatpush.bf16.msra.mxu3 %v702_v34 }
  0x1a   : > { %426 = vmatpush.bf16.msra.mxu2 %v698_v11 }
  0x1c   : > { %285 = vmatpush.bf16.msra.mxu0 %v689_v12 }
  0x1d   : > { %346 = vmatpush.bf16.msra.mxu1 %v681_v13 }
  0x1e   : > { %427 = vmatpush.bf16.msra.mxu2 %v697_v14 }
  0x20   : > { %286 = vmatpush.bf16.msra.mxu0 %v688_v15 }
  0x21   : > { %347 = vmatpush.bf16.msra.mxu1 %v680_v16 }
  0x22   : > { %428 = vmatpush.bf16.msra.mxu2 %v696_v17 }
  0x24   : > { %287 = vmatpush.bf16.msra.mxu0 %v687_v18 }
  0x25   : > { %348 = vmatpush.bf16.msra.mxu1 %v679_v19 }
  0x26   : > { %429 = vmatpush.bf16.msra.mxu2 %v695_v22 }
  0x28   : > { %288 = vmatpush.bf16.msra.mxu0 %v686_v26 }
  0x29   : > { %349 = vmatpush.bf16.msra.mxu1 %v678_v27 }
  0x2a   : > { %430 = vmatpush.bf16.msra.mxu2 %v694_v29 }
  0x2b   : > { %289 = vmatmul.bf16.vlgmr.msra.gmra.mxu0 %v215_v30 }
  0x2c   : > { %350 = vmatmul.bf16.vlgmr.msra.gmra.mxu1 %v196_v31 }
  0x2d   : > { %431 = vmatmul.bf16.vlgmr.msra.gmra.mxu2 %v357_v32 }
  0xa8   : > { %v290_v35 = vpop.f32.mrf.mxu0 }
  0xa9   : > { %v351_v36 = vpop.f32.mrf.mxu1 }
  0xaa   : > { %v352_v37 = vadd.f32 %v351_v36, %v290_v35 }
  0xb0   : > { %v432_v38 = vpop.f32.mrf.mxu2  ;;  %v292_v40 = vpop.f32.mrf.mxu0 }
  0xb1   : > { %v436_v39 = vadd.f32 %v432_v38, %v352_v37  ;;  %v353_v41 = vpop.f32.mrf.mxu1 }
  0xb3   : > { %v437_v42 = vmax.f32 %v436_v39, 0.0 }
  0xb5   : > { %v438_v43 = vpack.c.bf16 %v437_v42, %v437_v42 }
  0xb7   : > { %675 = vmatmul.msk.bf16.vlgmr.msra.gmra.mxu3 %vm459_vm0, %v438_v43 }
  0xb8   : > { %v434_v44 = vpop.f32.mrf.mxu2 }
 0x13a   : > { %v472_v46 = vpop.f32.mrf.mxu3 }
 0x13b   : > { %v473_v47 = vadd.f32 %v712_v45, %v472_v46 }
 0x13d   : > { %v476_v48 = vadd.f32 %v473_v47, %v213_v20 }
 0x13f   : > { %v477_v49 = vmax.f32 %v476_v48, 0.0 }
 0x141   : > { %478 = vst [vmem:[%s192_s30] sm:$0xf] %v477_v49 }
 0x142   : > { %v474_v50 = vpop.f32.mrf.mxu3 }
 0x143 PF: > { %s14_s15 = sadd.s32 1, %s719_s15  }
 0x144   : > { %p11_p4 = scmp.ge.s32.totalorder %s14_s15, 4  }
 0x146   :  { %13 = sbr.rel (!%p11_p4) target bundleno = 1 (0x1), region = 68 }

</bundles_post_ra>
